<compile_context>
chip_gen: v7x
topology: tpu7x:2x2x1
jax: 0.10.0
libtpu: 0.0.40
codegen_flags: <defaults>
</compile_context>

<pallas_src>
import jax
import jax.numpy as jnp
from jax import lax
from jax.experimental import pallas as pl
from jax.experimental.pallas import tpu as pltpu


# ----------------------------- Pallas recurrent kernel ----------------------------- #
def _make_gru_kernel(num_dirs, time_block, hidden, emit_last_only, unroll):
    """Fused-direction GRU recurrence over one time block per grid step.

    Ref layout (inputs, outputs, scratch):
      gi_refs[d]  : (Tc, B, 3H)   hoisted x @ W_ih^T (+ b_ih, + b_hh for r/z),
                                  gate order [r | z | n] along the lane axis
      bhn_refs[d] : (1, H)        n-gate hidden bias (must stay inside r * (...))
      whh_hbm     : (num_dirs, H, 3H) W_hh^T in HBM (memory_space=pl.ANY)
      out_refs    : full mode -> per-direction (Tc, B, H) sequence blocks
                    last mode -> single revisiting (1, B, H) block (forward h_{T-1})
      whh_vmem    : (num_dirs, H, 3H) single-buffered VMEM copy of W_hh^T
      copy_sem    : DMA semaphore
      h_refs[d]   : (B, H) f32 carried hidden state (persists across grid steps)
    """
    num_outs = 1 if emit_last_only else num_dirs

    def kernel(*refs):
        idx = 0
        gi_refs = refs[idx:idx + num_dirs]; idx += num_dirs
        bhn_refs = refs[idx:idx + num_dirs]; idx += num_dirs
        whh_hbm = refs[idx]; idx += 1
        out_refs = refs[idx:idx + num_outs]; idx += num_outs
        whh_vmem = refs[idx]; idx += 1
        copy_sem = refs[idx]; idx += 1
        h_refs = refs[idx:idx + num_dirs]

        t = pl.program_id(0)
        B = h_refs[0].shape[0]
        H = hidden

        @pl.when(t == 0)
        def _init():
            # One-time, single-buffered copy of the recurrent weights into VMEM.
            cp = pltpu.make_async_copy(whh_hbm, whh_vmem, copy_sem.at[0])
            cp.start()
            for d in range(num_dirs):
                h_refs[d][...] = jnp.zeros_like(h_refs[d])
            cp.wait()

        # Hoisted (B, H) broadcast of the n-gate hidden bias: keep broadcast_in_dim
        # out of the unrolled hot loop (JAX does not CSE it).
        bhn_b = [jnp.broadcast_to(bhn_refs[d][...].astype(jnp.float32), (B, H))
                 for d in range(num_dirs)]

        def step(i, carry):
            new_carry = []
            for d in range(num_dirs):
                h = carry[d]                                   # (B, H) f32
                # Direction 0 walks the block forward, direction 1 backward.
                ti = i if d == 0 else time_block - 1 - i
                gi = gi_refs[d][ti].astype(jnp.float32)        # (B, 3H)
                # Single fused recurrent matmul for all three gates.
                gh = jnp.dot(h.astype(whh_vmem.dtype), whh_vmem[d],
                             preferred_element_type=jnp.float32)   # (B, 3H)
                r = jax.nn.sigmoid(gi[:, 0:H] + gh[:, 0:H])
                z = jax.nn.sigmoid(gi[:, H:2 * H] + gh[:, H:2 * H])
                n = jnp.tanh(gi[:, 2 * H:] + r * (gh[:, 2 * H:] + bhn_b[d]))
                h_new = (1.0 - z) * n + z * h
                if not emit_last_only:
                    out_refs[d][pl.ds(ti, 1)] = h_new[None].astype(out_refs[d].dtype)
                new_carry.append(h_new)
            return tuple(new_carry)

        carry0 = tuple(h_refs[d][...] for d in range(num_dirs))
        carry = lax.fori_loop(0, time_block, step, carry0, unroll=unroll)
        for d in range(num_dirs):
            h_refs[d][...] = carry[d]
        if emit_last_only:
            # Revisiting (1, B, H) output block stays resident in VMEM across the
            # whole grid and is flushed to HBM once at the end -> forward h_{T-1}.
            out_refs[0][...] = carry[0][None].astype(out_refs[0].dtype)

    return kernel


# --------------------------------- small helpers ------------------------------------ #
def _pick_time_block(T, target):
    tc = 1
    for c in range(1, min(T, target) + 1):
        if T % c == 0:
            tc = c
    return tc


def _pick_unroll(time_block, hidden):
    # Full unroll for moderate H; cap it at large H so the live (B,3H) gi/gh
    # temporaries of the interleaved directions stay within 64 vregs (no spills).
    return time_block if hidden <= 512 else max(1, min(time_block, 4))


def _compiler_params(vmem_limit_bytes):
    # 64 MiB is safe on every generation (v7x physical VMEM is 64 MiB); raise toward
    # ~96-112 MiB on v5e/v6e for large H / deeper time blocks.
    limit = 64 * 1024 * 1024 if vmem_limit_bytes is None else vmem_limit_bytes
    return pltpu.CompilerParams(dimension_semantics=("arbitrary",),
                                vmem_limit_bytes=limit)


def _input_projection(x_streams, w_ih, b_fold, compute_dtype):
    """Hoisted input projection: sum over input streams of x_s @ W_ih_part^T.

    Consuming the previous layer's per-direction outputs as separate streams (and
    splitting W_ih's columns accordingly) avoids materializing the (T, B, 2H) concat
    between layers.  Output layout is (T, B, 3H), gate order [r|z|n], matching the
    fused recurrent matmul in the kernel (no gate-major relayout).
    """
    gi = None
    off = 0
    for x_s in x_streams:
        ds = x_s.shape[-1]
        w_part = jnp.transpose(w_ih[:, off:off + ds]).astype(compute_dtype)  # (ds, 3H)
        contrib = jnp.einsum('tbd,dk->tbk', x_s.astype(compute_dtype), w_part,
                             preferred_element_type=jnp.float32,
                             precision=lax.Precision.HIGHEST)
        gi = contrib if gi is None else gi + contrib
        off += ds
    gi = gi + b_fold[None, None, :]
    return gi.astype(compute_dtype)


# ------------------------------- per-layer wrappers --------------------------------- #
def gru_layer_fused(x_streams, dir_params, *, compute_dtype=jnp.float32,
                    time_block_target=16, vmem_limit_bytes=None):
    """One (non-final) GRU layer, all directions fused in one pallas_call.

    Returns per-direction (T, B, H) outputs in compute_dtype (the backward direction
    is already stored in original time order via its output index_map).
    """
    T, B = x_streams[0].shape[:2]
    num_dirs = len(dir_params)
    H = dir_params[0][1].shape[1]
    Tc = _pick_time_block(T, time_block_target)
    nb = T // Tc
    unroll = _pick_unroll(Tc, H)

    gi_list, bhn_list, whh_list = [], [], []
    for (w_ih, w_hh, b_ih, b_hh) in dir_params:
        w_ih = jnp.asarray(w_ih, jnp.float32)
        w_hh = jnp.asarray(w_hh, jnp.float32)
        b_ih = jnp.asarray(b_ih, jnp.float32)
        b_hh = jnp.asarray(b_hh, jnp.float32)
        # Fold b_ih (all gates) plus b_hh (r, z gates only) into the hoisted GEMM.
        b_fold = b_ih + jnp.concatenate([b_hh[:2 * H], jnp.zeros((H,), jnp.float32)])
        gi_list.append(_input_projection(x_streams, w_ih, b_fold, compute_dtype))
        bhn_list.append(b_hh[2 * H:].reshape(1, H))            # n-gate b_hh
        whh_list.append(jnp.transpose(w_hh))                   # (H, 3H), gates on lanes
    whh_all = jnp.stack(whh_list, axis=0).astype(compute_dtype)   # (ND, H, 3H)

    in_specs = []
    for d in range(num_dirs):
        if d == 0:
            in_specs.append(pl.BlockSpec((Tc, B, 3 * H), lambda t: (t, 0, 0)))
        else:  # backward direction reads time blocks in reverse order (no HBM flips)
            in_specs.append(
                pl.BlockSpec((Tc, B, 3 * H), lambda t, _nb=nb: (_nb - 1 - t, 0, 0)))
    for _ in range(num_dirs):
        in_specs.append(pl.BlockSpec((1, H), lambda t: (0, 0)))
    in_specs.append(pl.BlockSpec(memory_space=pl.ANY))          # W_hh stays in HBM

    out_specs, out_shapes = [], []
    for d in range(num_dirs):
        if d == 0:
            out_specs.append(pl.BlockSpec((Tc, B, H), lambda t: (t, 0, 0)))
        else:
            out_specs.append(
                pl.BlockSpec((Tc, B, H), lambda t, _nb=nb: (_nb - 1 - t, 0, 0)))
        out_shapes.append(jax.ShapeDtypeStruct((T, B, H), compute_dtype))

    scratch_shapes = (
        [pltpu.VMEM((num_dirs, H, 3 * H), compute_dtype),       # single-buffered W_hh^T
         pltpu.SemaphoreType.DMA((1,))]
        + [pltpu.VMEM((B, H), jnp.float32) for _ in range(num_dirs)])

    outs = pl.pallas_call(
        _make_gru_kernel(num_dirs, Tc, H, False, unroll),
        out_shape=tuple(out_shapes),
        grid_spec=pltpu.PrefetchScalarGridSpec(
            num_scalar_prefetch=0,
            grid=(nb,),
            in_specs=in_specs,
            out_specs=tuple(out_specs),
            scratch_shapes=scratch_shapes,
        ),
        compiler_params=_compiler_params(vmem_limit_bytes),
    )(*gi_list, *bhn_list, whh_all)
    return list(outs)


def gru_layer_last(x_streams, dir_params, *, compute_dtype=jnp.float32,
                   time_block_target=16, vmem_limit_bytes=None):
    """Final GRU layer specialized to emit only output[:, -1, :].

    Forward direction: full recurrence in the kernel, but only a resident (1, B, H)
    output block (flushed once) instead of the (T, B, H) HBM sequence writeback.
    Backward direction: its contribution to the last timestep is exactly one GRU cell
    step on x_{T-1} with h0 = 0, done in plain JAX.  Returns (B, num_dirs*H) float32.
    """
    T, B = x_streams[0].shape[:2]
    num_dirs = len(dir_params)
    H = dir_params[0][1].shape[1]
    Tc = _pick_time_block(T, time_block_target)
    nb = T // Tc
    unroll = _pick_unroll(Tc, H)

    # ---------------- forward direction: kernel with emit_last_only ----------------- #
    w_ih, w_hh, b_ih, b_hh = (jnp.asarray(p, jnp.float32) for p in dir_params[0])
    b_fold = b_ih + jnp.concatenate([b_hh[:2 * H], jnp.zeros((H,), jnp.float32)])
    gi = _input_projection(x_streams, w_ih, b_fold, compute_dtype)
    bhn = b_hh[2 * H:].reshape(1, H)
    whh = jnp.transpose(w_hh)[None].astype(compute_dtype)       # (1, H, 3H)

    h_fwd = pl.pallas_call(
        _make_gru_kernel(1, Tc, H, True, unroll),
        out_shape=jax.ShapeDtypeStruct((1, B, H), jnp.float32),
        grid_spec=pltpu.PrefetchScalarGridSpec(
            num_scalar_prefetch=0,
            grid=(nb,),
            in_specs=[pl.BlockSpec((Tc, B, 3 * H), lambda t: (t, 0, 0)),
                      pl.BlockSpec((1, H), lambda t: (0, 0)),
                      pl.BlockSpec(memory_space=pl.ANY)],
            out_specs=pl.BlockSpec((1, B, H), lambda t: (0, 0, 0)),   # resident block
            scratch_shapes=[pltpu.VMEM((1, H, 3 * H), compute_dtype),
                            pltpu.SemaphoreType.DMA((1,)),
                            pltpu.VMEM((B, H), jnp.float32)],
        ),
        compiler_params=_compiler_params(vmem_limit_bytes),
    )(gi, bhn, whh)[0]                                           # (B, H)

    if num_dirs == 1:
        return h_fwd

    # ------------ backward direction: one plain-JAX cell step on x_{T-1} ------------ #
    w_ih_b, _w_hh_b, b_ih_b, b_hh_b = (jnp.asarray(p, jnp.float32) for p in dir_params[1])
    gi_b = jnp.zeros((B, 3 * H), jnp.float32)
    off = 0
    for x_s in x_streams:
        ds = x_s.shape[-1]
        gi_b = gi_b + x_s[-1].astype(jnp.float32) @ jnp.transpose(w_ih_b[:, off:off + ds])
        off += ds
    gi_b = gi_b + b_ih_b
    r = jax.nn.sigmoid(gi_b[:, :H] + b_hh_b[:H])
    z = jax.nn.sigmoid(gi_b[:, H:2 * H] + b_hh_b[H:2 * H])
    n = jnp.tanh(gi_b[:, 2 * H:] + r * b_hh_b[2 * H:])
    h_bwd = (1.0 - z) * n                                        # h0 == 0
    return jnp.concatenate([h_fwd, h_bwd], axis=-1)


# --------------------------------- module wrapper ------------------------------------ #
def init_gru_params(key, input_dim, hidden_dim, num_layers, bidirectional):
    """Deterministic PyTorch-like init: uniform(-1/sqrt(H), 1/sqrt(H))."""
    num_dirs = 2 if bidirectional else 1
    k = 1.0 / float(hidden_dim) ** 0.5
    params = {}
    for layer in range(num_layers):
        in_size = input_dim if layer == 0 else hidden_dim * num_dirs
        for d in range(num_dirs):
            key, k1, k2, k3, k4 = jax.random.split(key, 5)
            params[(layer, d)] = (
                jax.random.uniform(k1, (3 * hidden_dim, in_size), jnp.float32, -k, k),
                jax.random.uniform(k2, (3 * hidden_dim, hidden_dim), jnp.float32, -k, k),
                jax.random.uniform(k3, (3 * hidden_dim,), jnp.float32, -k, k),
                jax.random.uniform(k4, (3 * hidden_dim,), jnp.float32, -k, k))
    return params


def gru_forward(x, params, num_layers, bidirectional, *, compute_dtype=jnp.float32,
                time_block_target=16, vmem_limit_bytes=None):
    """Matches GRU.forward: returns gru(x)[0][:, -1, :].

    x: (B, T, input_dim) batch_first.  Returns (B, hidden_dim * num_dirs) float32.
    """
    num_dirs = 2 if bidirectional else 1
    kw = dict(compute_dtype=compute_dtype, time_block_target=time_block_target,
              vmem_limit_bytes=vmem_limit_bytes)
    streams = [jnp.transpose(x, (1, 0, 2)).astype(jnp.float32)]  # (T, B, D) time-major
    for layer in range(num_layers - 1):
        dir_params = [params[(layer, d)] for d in range(num_dirs)]
        streams = gru_layer_fused(streams, dir_params, **kw)
    dir_params = [params[(num_layers - 1, d)] for d in range(num_dirs)]
    return gru_layer_last(streams, dir_params, **kw)


# -------------------------------- pure-JAX reference --------------------------------- #
def _gru_cell_ref(h, x_t, wih, whh, bih, bhh):
    H = h.shape[-1]
    gi = x_t @ wih.T + bih
    gh = h @ whh.T + bhh
    r = jax.nn.sigmoid(gi[:, :H] + gh[:, :H])
    z = jax.nn.sigmoid(gi[:, H:2 * H] + gh[:, H:2 * H])
    n = jnp.tanh(gi[:, 2 * H:] + r * gh[:, 2 * H:])
    return (1.0 - z) * n + z * h


def gru_forward_ref(x, params, num_layers, bidirectional, hidden_dim):
    num_dirs = 2 if bidirectional else 1
    layer_in = jnp.transpose(x, (1, 0, 2)).astype(jnp.float32)
    B = x.shape[0]
    for layer in range(num_layers):
        outs = []
        for d in range(num_dirs):
            wih, whh, bih, bhh = params[(layer, d)]
            xin = layer_in if d == 0 else layer_in[::-1]
            h0 = jnp.zeros((B, hidden_dim), jnp.float32)

            def step(h, x_t, wih=wih, whh=whh, bih=bih, bhh=bhh):
                h_new = _gru_cell_ref(h, x_t, wih, whh, bih, bhh)
                return h_new, h_new

            _, h_seq = lax.scan(step, h0, xin)
            if d == 1:
                h_seq = h_seq[::-1]
            outs.append(h_seq)
        layer_in = jnp.concatenate(outs, axis=-1)
    return jnp.transpose(layer_in, (1, 0, 2))[:, -1, :]


# ---------------------------------------- main --------------------------------------- #
if __name__ == "__main__":
    B, T = 2, 8
    INPUT_DIM, HIDDEN_DIM = 16, 32

    key = jax.random.PRNGKey(0)
    kx, kp = jax.random.split(key)
    x = jax.random.normal(kx, (B, T, INPUT_DIM), jnp.float32)

    # 3-layer bidirectional, f32, time_block_target=4 -> nb=2 (exercises the fused
    # layers with 1- and 2-stream inputs, reversed-time index maps across blocks, and
    # the last-layer emit-last-only fast path with a resident output block).
    params = init_gru_params(kp, INPUT_DIM, HIDDEN_DIM, 3, True)
    out = jax.block_until_ready(gru_forward(x, params, 3, True, time_block_target=4))
    ref = jax.block_until_ready(gru_forward_ref(x, params, 3, True, HIDDEN_DIM))
    assert out.shape == (B, 2 * HIDDEN_DIM), out.shape
    assert jnp.allclose(out, ref, atol=2e-3, rtol=2e-3), float(jnp.max(jnp.abs(out - ref)))

    # 2-layer unidirectional, f32 (exercises the num_dirs == 1 paths).
    params_u = init_gru_params(kp, INPUT_DIM, HIDDEN_DIM, 2, False)
    out_u = jax.block_until_ready(gru_forward(x, params_u, 2, False))
    ref_u = jax.block_until_ready(gru_forward_ref(x, params_u, 2, False, HIDDEN_DIM))
    assert out_u.shape == (B, HIDDEN_DIM), out_u.shape
    assert jnp.allclose(out_u, ref_u, atol=2e-3, rtol=2e-3), float(jnp.max(jnp.abs(out_u - ref_u)))

    # bf16 production path for the MXU/HBM streams (gate math stays f32); loose check.
    out_bf = jax.block_until_ready(
        gru_forward(x, params, 3, True, compute_dtype=jnp.bfloat16))
    assert jnp.allclose(out_bf, ref, atol=1e-1, rtol=1e-1), float(jnp.max(jnp.abs(out_bf - ref)))

    print("KERNEL_OK")
</pallas_src>

<mosaic_0001>
module attributes {stable_mosaic.version = 11 : i64} {
  func.func @kernel(%arg0: i32, %arg1: memref<4x2x96xf32, #tpu.memory_space<vmem>>, %arg2: memref<4x2x96xf32, #tpu.memory_space<vmem>>, %arg3: memref<1x32xf32, #tpu.memory_space<vmem>>, %arg4: memref<1x32xf32, #tpu.memory_space<vmem>>, %arg5: memref<2x32x96xf32, #tpu.memory_space<any>>, %arg6: memref<4x2x32xf32, #tpu.memory_space<vmem>>, %arg7: memref<4x2x32xf32, #tpu.memory_space<vmem>>, %arg8: memref<2x32x96xf32, #tpu.memory_space<vmem>>, %arg9: memref<1x!tpu.dma_semaphore, #tpu.memory_space<semaphore_mem>>, %arg10: memref<2x32xf32, #tpu.memory_space<vmem>>, %arg11: memref<2x32xf32, #tpu.memory_space<vmem>>) attributes {dimension_semantics = [#tpu.dimension_semantics<arbitrary>], iteration_bounds = array<i64: 2>, scalar_prefetch = 0 : i64, scratch_operands = 4 : i64, tpu.core_type = #tpu.core_type<tc>, window_params = [{transform_indices = @transform_0, window_bounds = array<i64: 4, 2, 96>}, {transform_indices = @transform_1, window_bounds = array<i64: 4, 2, 96>}, {pipeline_mode = #tpu.pipeline_mode<synchronous>, transform_indices = @transform_2, window_bounds = array<i64: 1, 32>}, {pipeline_mode = #tpu.pipeline_mode<synchronous>, transform_indices = @transform_3, window_bounds = array<i64: 1, 32>}, {}, {transform_indices = @transform_5, window_bounds = array<i64: 4, 2, 32>}, {transform_indices = @transform_6, window_bounds = array<i64: 4, 2, 32>}]} {
    %c0_i32 = arith.constant 0 : i32
    %0 = arith.cmpi eq, %arg0, %c0_i32 : i32
    %1 = arith.extui %0 : i1 to i32
    %c0_i32_0 = arith.constant 0 : i32
    %2 = arith.cmpi ne, %1, %c0_i32_0 : i32
    scf.if %2 {
      %c0_i32_103 = arith.constant 0 : i32
      %305 = tpu.memref_slice %arg9[%c0_i32_103] : memref<1x!tpu.dma_semaphore, #tpu.memory_space<semaphore_mem>> -> memref<1x!tpu.dma_semaphore, #tpu.memory_space<semaphore_mem>>
      %306 = tpu.memref_squeeze %305 : memref<1x!tpu.dma_semaphore, #tpu.memory_space<semaphore_mem>> -> memref<!tpu.dma_semaphore, #tpu.memory_space<semaphore_mem>>
      tpu.enqueue_dma source(%arg5 : memref<2x32x96xf32, #tpu.memory_space<any>>) target(%arg8 : memref<2x32x96xf32, #tpu.memory_space<vmem>>) target_semaphore(%306 : memref<!tpu.dma_semaphore, #tpu.memory_space<semaphore_mem>>)
      %cst_104 = arith.constant 0.000000e+00 : f32
      %307 = vector.broadcast %cst_104 : f32 to vector<2x32xf32>
      %c0_105 = arith.constant 0 : index
      %c0_106 = arith.constant 0 : index
      %308 = vector.load %arg10[%c0_105, %c0_106] : memref<2x32xf32, #tpu.memory_space<vmem>>, vector<2x32xf32>
      tpu.vector_store %arg10[%c0_105, %c0_106], %307 {strides = array<i32>} : memref<2x32xf32, #tpu.memory_space<vmem>>, vector<2x32xf32>,
      %cst_107 = arith.constant 0.000000e+00 : f32
      %309 = vector.broadcast %cst_107 : f32 to vector<2x32xf32>
      %c0_108 = arith.constant 0 : index
      %c0_109 = arith.constant 0 : index
      %310 = vector.load %arg11[%c0_108, %c0_109] : memref<2x32xf32, #tpu.memory_space<vmem>>, vector<2x32xf32>
      tpu.vector_store %arg11[%c0_108, %c0_109], %309 {strides = array<i32>} : memref<2x32xf32, #tpu.memory_space<vmem>>, vector<2x32xf32>,
      %c0_i32_110 = arith.constant 0 : i32
      %311 = tpu.memref_slice %arg9[%c0_i32_110] : memref<1x!tpu.dma_semaphore, #tpu.memory_space<semaphore_mem>> -> memref<1x!tpu.dma_semaphore, #tpu.memory_space<semaphore_mem>>
      %312 = tpu.memref_squeeze %311 : memref<1x!tpu.dma_semaphore, #tpu.memory_space<semaphore_mem>> -> memref<!tpu.dma_semaphore, #tpu.memory_space<semaphore_mem>>
      tpu.wait_dma2 semaphore(%312 : memref<!tpu.dma_semaphore, #tpu.memory_space<semaphore_mem>>) src(%arg5 : memref<2x32x96xf32, #tpu.memory_space<any>>) dst(%arg8 : memref<2x32x96xf32, #tpu.memory_space<vmem>>)
    } else {
    }
    %c0 = arith.constant 0 : index
    %c0_1 = arith.constant 0 : index
    %3 = vector.load %arg3[%c0, %c0_1] : memref<1x32xf32, #tpu.memory_space<vmem>>, vector<1x32xf32>
    %4 = vector.shape_cast %3 : vector<1x32xf32> to vector<1x32xf32>
    %5 = vector.broadcast %4 : vector<1x32xf32> to vector<2x32xf32>
    %c0_2 = arith.constant 0 : index
    %c0_3 = arith.constant 0 : index
    %6 = vector.load %arg4[%c0_2, %c0_3] : memref<1x32xf32, #tpu.memory_space<vmem>>, vector<1x32xf32>
    %7 = vector.shape_cast %6 : vector<1x32xf32> to vector<1x32xf32>
    %8 = vector.broadcast %7 : vector<1x32xf32> to vector<2x32xf32>
    %c0_4 = arith.constant 0 : index
    %c0_5 = arith.constant 0 : index
    %9 = vector.load %arg10[%c0_4, %c0_5] : memref<2x32xf32, #tpu.memory_space<vmem>>, vector<2x32xf32>
    %c0_6 = arith.constant 0 : index
    %c0_7 = arith.constant 0 : index
    %10 = vector.load %arg11[%c0_6, %c0_7] : memref<2x32xf32, #tpu.memory_space<vmem>>, vector<2x32xf32>
    %c0_i32_8 = arith.constant 0 : i32
    %11 = arith.index_cast %c0_i32_8 : i32 to index
    %c0_9 = arith.constant 0 : index
    %c0_10 = arith.constant 0 : index
    %12 = vector.load %arg1[%11, %c0_9, %c0_10] : memref<4x2x96xf32, #tpu.memory_space<vmem>>, vector<1x2x96xf32>
    %13 = vector.shape_cast %12 : vector<1x2x96xf32> to vector<2x96xf32>
    %c0_11 = arith.constant 0 : index
    %c0_12 = arith.constant 0 : index
    %c0_13 = arith.constant 0 : index
    %14 = vector.load %arg8[%c0_11, %c0_12, %c0_13] : memref<2x32x96xf32, #tpu.memory_space<vmem>>, vector<1x32x96xf32>
    %15 = vector.shape_cast %14 : vector<1x32x96xf32> to vector<32x96xf32>
    %cst = arith.constant dense<0.000000e+00> : vector<2x96xf32>
    %16 = tpu.matmul %9, %15, %cst {dimension_numbers = #tpu.dot_dimension_numbers<[1], [0], [0], [1], [0, 0, 1, 1], [], []>} : vector<2x32xf32>, vector<32x96xf32>, vector<2x96xf32> -> vector<2x96xf32>
    %17 = vector.extract_strided_slice %13 {offsets = [0, 0], sizes = [2, 32], strides = [1, 1]} : vector<2x96xf32> to vector<2x32xf32>
    %18 = vector.extract_strided_slice %16 {offsets = [0, 0], sizes = [2, 32], strides = [1, 1]} : vector<2x96xf32> to vector<2x32xf32>
    %19 = arith.addf %17, %18 : vector<2x32xf32>
    %20 = arith.negf %19 : vector<2x32xf32>
    %21 = math.exp %20 : vector<2x32xf32>
    %cst_14 = arith.constant 1.000000e+00 : f32
    %22 = vector.broadcast %cst_14 : f32 to vector<2x32xf32>
    %23 = arith.addf %22, %21 : vector<2x32xf32>
    %24 = arith.divf %22, %23 : vector<2x32xf32>
    %25 = vector.extract_strided_slice %13 {offsets = [0, 32], sizes = [2, 32], strides = [1, 1]} : vector<2x96xf32> to vector<2x32xf32>
    %26 = vector.extract_strided_slice %16 {offsets = [0, 32], sizes = [2, 32], strides = [1, 1]} : vector<2x96xf32> to vector<2x32xf32>
    %27 = arith.addf %25, %26 : vector<2x32xf32>
    %28 = arith.negf %27 : vector<2x32xf32>
    %29 = math.exp %28 : vector<2x32xf32>
    %cst_15 = arith.constant 1.000000e+00 : f32
    %30 = vector.broadcast %cst_15 : f32 to vector<2x32xf32>
    %31 = arith.addf %30, %29 : vector<2x32xf32>
    %32 = arith.divf %30, %31 : vector<2x32xf32>
    %33 = vector.extract_strided_slice %13 {offsets = [0, 64], sizes = [2, 32], strides = [1, 1]} : vector<2x96xf32> to vector<2x32xf32>
    %34 = vector.extract_strided_slice %16 {offsets = [0, 64], sizes = [2, 32], strides = [1, 1]} : vector<2x96xf32> to vector<2x32xf32>
    %35 = arith.addf %34, %5 : vector<2x32xf32>
    %36 = arith.mulf %24, %35 : vector<2x32xf32>
    %37 = arith.addf %33, %36 : vector<2x32xf32>
    %38 = math.tanh %37 : vector<2x32xf32>
    %cst_16 = arith.constant 1.000000e+00 : f32
    %39 = vector.broadcast %cst_16 : f32 to vector<2x32xf32>
    %40 = arith.subf %39, %32 : vector<2x32xf32>
    %41 = arith.mulf %40, %38 : vector<2x32xf32>
    %42 = arith.mulf %32, %9 : vector<2x32xf32>
    %43 = arith.addf %41, %42 : vector<2x32xf32>
    %44 = vector.shape_cast %43 : vector<2x32xf32> to vector<1x2x32xf32>
    %45 = arith.index_cast %c0_i32_8 : i32 to index
    %c0_17 = arith.constant 0 : index
    %c0_18 = arith.constant 0 : index
    %46 = vector.load %arg6[%45, %c0_17, %c0_18] : memref<4x2x32xf32, #tpu.memory_space<vmem>>, vector<1x2x32xf32>
    tpu.vector_store %arg6[%45, %c0_17, %c0_18], %44 {strides = array<i32>} : memref<4x2x32xf32, #tpu.memory_space<vmem>>, vector<1x2x32xf32>,
    %c3_i32 = arith.constant 3 : i32
    %47 = arith.subi %c3_i32, %c0_i32_8 : i32
    %48 = arith.index_cast %47 : i32 to index
    %c0_19 = arith.constant 0 : index
    %c0_20 = arith.constant 0 : index
    %49 = vector.load %arg2[%48, %c0_19, %c0_20] : memref<4x2x96xf32, #tpu.memory_space<vmem>>, vector<1x2x96xf32>
    %50 = vector.shape_cast %49 : vector<1x2x96xf32> to vector<2x96xf32>
    %c1 = arith.constant 1 : index
    %c0_21 = arith.constant 0 : index
    %c0_22 = arith.constant 0 : index
    %51 = vector.load %arg8[%c1, %c0_21, %c0_22] : memref<2x32x96xf32, #tpu.memory_space<vmem>>, vector<1x32x96xf32>
    %52 = vector.shape_cast %51 : vector<1x32x96xf32> to vector<32x96xf32>
    %cst_23 = arith.constant dense<0.000000e+00> : vector<2x96xf32>
    %53 = tpu.matmul %10, %52, %cst_23 {dimension_numbers = #tpu.dot_dimension_numbers<[1], [0], [0], [1], [0, 0, 1, 1], [], []>} : vector<2x32xf32>, vector<32x96xf32>, vector<2x96xf32> -> vector<2x96xf32>
    %54 = vector.extract_strided_slice %50 {offsets = [0, 0], sizes = [2, 32], strides = [1, 1]} : vector<2x96xf32> to vector<2x32xf32>
    %55 = vector.extract_strided_slice %53 {offsets = [0, 0], sizes = [2, 32], strides = [1, 1]} : vector<2x96xf32> to vector<2x32xf32>
    %56 = arith.addf %54, %55 : vector<2x32xf32>
    %57 = arith.negf %56 : vector<2x32xf32>
    %58 = math.exp %57 : vector<2x32xf32>
    %cst_24 = arith.constant 1.000000e+00 : f32
    %59 = vector.broadcast %cst_24 : f32 to vector<2x32xf32>
    %60 = arith.addf %59, %58 : vector<2x32xf32>
    %61 = arith.divf %59, %60 : vector<2x32xf32>
    %62 = vector.extract_strided_slice %50 {offsets = [0, 32], sizes = [2, 32], strides = [1, 1]} : vector<2x96xf32> to vector<2x32xf32>
    %63 = vector.extract_strided_slice %53 {offsets = [0, 32], sizes = [2, 32], strides = [1, 1]} : vector<2x96xf32> to vector<2x32xf32>
    %64 = arith.addf %62, %63 : vector<2x32xf32>
    %65 = arith.negf %64 : vector<2x32xf32>
    %66 = math.exp %65 : vector<2x32xf32>
    %cst_25 = arith.constant 1.000000e+00 : f32
    %67 = vector.broadcast %cst_25 : f32 to vector<2x32xf32>
    %68 = arith.addf %67, %66 : vector<2x32xf32>
    %69 = arith.divf %67, %68 : vector<2x32xf32>
    %70 = vector.extract_strided_slice %50 {offsets = [0, 64], sizes = [2, 32], strides = [1, 1]} : vector<2x96xf32> to vector<2x32xf32>
    %71 = vector.extract_strided_slice %53 {offsets = [0, 64], sizes = [2, 32], strides = [1, 1]} : vector<2x96xf32> to vector<2x32xf32>
    %72 = arith.addf %71, %8 : vector<2x32xf32>
    %73 = arith.mulf %61, %72 : vector<2x32xf32>
    %74 = arith.addf %70, %73 : vector<2x32xf32>
    %75 = math.tanh %74 : vector<2x32xf32>
    %cst_26 = arith.constant 1.000000e+00 : f32
    %76 = vector.broadcast %cst_26 : f32 to vector<2x32xf32>
    %77 = arith.subf %76, %69 : vector<2x32xf32>
    %78 = arith.mulf %77, %75 : vector<2x32xf32>
    %79 = arith.mulf %69, %10 : vector<2x32xf32>
    %80 = arith.addf %78, %79 : vector<2x32xf32>
    %81 = vector.shape_cast %80 : vector<2x32xf32> to vector<1x2x32xf32>
    %82 = arith.index_cast %47 : i32 to index
    %c0_27 = arith.constant 0 : index
    %c0_28 = arith.constant 0 : index
    %83 = vector.load %arg7[%82, %c0_27, %c0_28] : memref<4x2x32xf32, #tpu.memory_space<vmem>>, vector<1x2x32xf32>
    tpu.vector_store %arg7[%82, %c0_27, %c0_28], %81 {strides = array<i32>} : memref<4x2x32xf32, #tpu.memory_space<vmem>>, vector<1x2x32xf32>,
    %c1_i32 = arith.constant 1 : i32
    %84 = arith.index_cast %c1_i32 : i32 to index
    %c0_29 = arith.constant 0 : index
    %c0_30 = arith.constant 0 : index
    %85 = vector.load %arg1[%84, %c0_29, %c0_30] : memref<4x2x96xf32, #tpu.memory_space<vmem>>, vector<1x2x96xf32>
    %86 = vector.shape_cast %85 : vector<1x2x96xf32> to vector<2x96xf32>
    %c0_31 = arith.constant 0 : index
    %c0_32 = arith.constant 0 : index
    %c0_33 = arith.constant 0 : index
    %87 = vector.load %arg8[%c0_31, %c0_32, %c0_33] : memref<2x32x96xf32, #tpu.memory_space<vmem>>, vector<1x32x96xf32>
    %88 = vector.shape_cast %87 : vector<1x32x96xf32> to vector<32x96xf32>
    %cst_34 = arith.constant dense<0.000000e+00> : vector<2x96xf32>
    %89 = tpu.matmul %43, %88, %cst_34 {dimension_numbers = #tpu.dot_dimension_numbers<[1], [0], [0], [1], [0, 0, 1, 1], [], []>} : vector<2x32xf32>, vector<32x96xf32>, vector<2x96xf32> -> vector<2x96xf32>
    %90 = vector.extract_strided_slice %86 {offsets = [0, 0], sizes = [2, 32], strides = [1, 1]} : vector<2x96xf32> to vector<2x32xf32>
    %91 = vector.extract_strided_slice %89 {offsets = [0, 0], sizes = [2, 32], strides = [1, 1]} : vector<2x96xf32> to vector<2x32xf32>
    %92 = arith.addf %90, %91 : vector<2x32xf32>
    %93 = arith.negf %92 : vector<2x32xf32>
    %94 = math.exp %93 : vector<2x32xf32>
    %cst_35 = arith.constant 1.000000e+00 : f32
    %95 = vector.broadcast %cst_35 : f32 to vector<2x32xf32>
    %96 = arith.addf %95, %94 : vector<2x32xf32>
    %97 = arith.divf %95, %96 : vector<2x32xf32>
    %98 = vector.extract_strided_slice %86 {offsets = [0, 32], sizes = [2, 32], strides = [1, 1]} : vector<2x96xf32> to vector<2x32xf32>
    %99 = vector.extract_strided_slice %89 {offsets = [0, 32], sizes = [2, 32], strides = [1, 1]} : vector<2x96xf32> to vector<2x32xf32>
    %100 = arith.addf %98, %99 : vector<2x32xf32>
    %101 = arith.negf %100 : vector<2x32xf32>
    %102 = math.exp %101 : vector<2x32xf32>
    %cst_36 = arith.constant 1.000000e+00 : f32
    %103 = vector.broadcast %cst_36 : f32 to vector<2x32xf32>
    %104 = arith.addf %103, %102 : vector<2x32xf32>
    %105 = arith.divf %103, %104 : vector<2x32xf32>
    %106 = vector.extract_strided_slice %86 {offsets = [0, 64], sizes = [2, 32], strides = [1, 1]} : vector<2x96xf32> to vector<2x32xf32>
    %107 = vector.extract_strided_slice %89 {offsets = [0, 64], sizes = [2, 32], strides = [1, 1]} : vector<2x96xf32> to vector<2x32xf32>
    %108 = arith.addf %107, %5 : vector<2x32xf32>
    %109 = arith.mulf %97, %108 : vector<2x32xf32>
    %110 = arith.addf %106, %109 : vector<2x32xf32>
    %111 = math.tanh %110 : vector<2x32xf32>
    %cst_37 = arith.constant 1.000000e+00 : f32
    %112 = vector.broadcast %cst_37 : f32 to vector<2x32xf32>
    %113 = arith.subf %112, %105 : vector<2x32xf32>
    %114 = arith.mulf %113, %111 : vector<2x32xf32>
    %115 = arith.mulf %105, %43 : vector<2x32xf32>
    %116 = arith.addf %114, %115 : vector<2x32xf32>
    %117 = vector.shape_cast %116 : vector<2x32xf32> to vector<1x2x32xf32>
    %118 = arith.index_cast %c1_i32 : i32 to index
    %c0_38 = arith.constant 0 : index
    %c0_39 = arith.constant 0 : index
    %119 = vector.load %arg6[%118, %c0_38, %c0_39] : memref<4x2x32xf32, #tpu.memory_space<vmem>>, vector<1x2x32xf32>
    tpu.vector_store %arg6[%118, %c0_38, %c0_39], %117 {strides = array<i32>} : memref<4x2x32xf32, #tpu.memory_space<vmem>>, vector<1x2x32xf32>,
    %c3_i32_40 = arith.constant 3 : i32
    %120 = arith.subi %c3_i32_40, %c1_i32 : i32
    %121 = arith.index_cast %120 : i32 to index
    %c0_41 = arith.constant 0 : index
    %c0_42 = arith.constant 0 : index
    %122 = vector.load %arg2[%121, %c0_41, %c0_42] : memref<4x2x96xf32, #tpu.memory_space<vmem>>, vector<1x2x96xf32>
    %123 = vector.shape_cast %122 : vector<1x2x96xf32> to vector<2x96xf32>
    %c1_43 = arith.constant 1 : index
    %c0_44 = arith.constant 0 : index
    %c0_45 = arith.constant 0 : index
    %124 = vector.load %arg8[%c1_43, %c0_44, %c0_45] : memref<2x32x96xf32, #tpu.memory_space<vmem>>, vector<1x32x96xf32>
    %125 = vector.shape_cast %124 : vector<1x32x96xf32> to vector<32x96xf32>
    %cst_46 = arith.constant dense<0.000000e+00> : vector<2x96xf32>
    %126 = tpu.matmul %80, %125, %cst_46 {dimension_numbers = #tpu.dot_dimension_numbers<[1], [0], [0], [1], [0, 0, 1, 1], [], []>} : vector<2x32xf32>, vector<32x96xf32>, vector<2x96xf32> -> vector<2x96xf32>
    %127 = vector.extract_strided_slice %123 {offsets = [0, 0], sizes = [2, 32], strides = [1, 1]} : vector<2x96xf32> to vector<2x32xf32>
    %128 = vector.extract_strided_slice %126 {offsets = [0, 0], sizes = [2, 32], strides = [1, 1]} : vector<2x96xf32> to vector<2x32xf32>
    %129 = arith.addf %127, %128 : vector<2x32xf32>
    %130 = arith.negf %129 : vector<2x32xf32>
    %131 = math.exp %130 : vector<2x32xf32>
    %cst_47 = arith.constant 1.000000e+00 : f32
    %132 = vector.broadcast %cst_47 : f32 to vector<2x32xf32>
    %133 = arith.addf %132, %131 : vector<2x32xf32>
    %134 = arith.divf %132, %133 : vector<2x32xf32>
    %135 = vector.extract_strided_slice %123 {offsets = [0, 32], sizes = [2, 32], strides = [1, 1]} : vector<2x96xf32> to vector<2x32xf32>
    %136 = vector.extract_strided_slice %126 {offsets = [0, 32], sizes = [2, 32], strides = [1, 1]} : vector<2x96xf32> to vector<2x32xf32>
    %137 = arith.addf %135, %136 : vector<2x32xf32>
    %138 = arith.negf %137 : vector<2x32xf32>
    %139 = math.exp %138 : vector<2x32xf32>
    %cst_48 = arith.constant 1.000000e+00 : f32
    %140 = vector.broadcast %cst_48 : f32 to vector<2x32xf32>
    %141 = arith.addf %140, %139 : vector<2x32xf32>
    %142 = arith.divf %140, %141 : vector<2x32xf32>
    %143 = vector.extract_strided_slice %123 {offsets = [0, 64], sizes = [2, 32], strides = [1, 1]} : vector<2x96xf32> to vector<2x32xf32>
    %144 = vector.extract_strided_slice %126 {offsets = [0, 64], sizes = [2, 32], strides = [1, 1]} : vector<2x96xf32> to vector<2x32xf32>
    %145 = arith.addf %144, %8 : vector<2x32xf32>
    %146 = arith.mulf %134, %145 : vector<2x32xf32>
    %147 = arith.addf %143, %146 : vector<2x32xf32>
    %148 = math.tanh %147 : vector<2x32xf32>
    %cst_49 = arith.constant 1.000000e+00 : f32
    %149 = vector.broadcast %cst_49 : f32 to vector<2x32xf32>
    %150 = arith.subf %149, %142 : vector<2x32xf32>
    %151 = arith.mulf %150, %148 : vector<2x32xf32>
    %152 = arith.mulf %142, %80 : vector<2x32xf32>
    %153 = arith.addf %151, %152 : vector<2x32xf32>
    %154 = vector.shape_cast %153 : vector<2x32xf32> to vector<1x2x32xf32>
    %155 = arith.index_cast %120 : i32 to index
    %c0_50 = arith.constant 0 : index
    %c0_51 = arith.constant 0 : index
    %156 = vector.load %arg7[%155, %c0_50, %c0_51] : memref<4x2x32xf32, #tpu.memory_space<vmem>>, vector<1x2x32xf32>
    tpu.vector_store %arg7[%155, %c0_50, %c0_51], %154 {strides = array<i32>} : memref<4x2x32xf32, #tpu.memory_space<vmem>>, vector<1x2x32xf32>,
    %c2_i32 = arith.constant 2 : i32
    %157 = arith.index_cast %c2_i32 : i32 to index
    %c0_52 = arith.constant 0 : index
    %c0_53 = arith.constant 0 : index
    %158 = vector.load %arg1[%157, %c0_52, %c0_53] : memref<4x2x96xf32, #tpu.memory_space<vmem>>, vector<1x2x96xf32>
    %159 = vector.shape_cast %158 : vector<1x2x96xf32> to vector<2x96xf32>
    %c0_54 = arith.constant 0 : index
    %c0_55 = arith.constant 0 : index
    %c0_56 = arith.constant 0 : index
    %160 = vector.load %arg8[%c0_54, %c0_55, %c0_56] : memref<2x32x96xf32, #tpu.memory_space<vmem>>, vector<1x32x96xf32>
    %161 = vector.shape_cast %160 : vector<1x32x96xf32> to vector<32x96xf32>
    %cst_57 = arith.constant dense<0.000000e+00> : vector<2x96xf32>
    %162 = tpu.matmul %116, %161, %cst_57 {dimension_numbers = #tpu.dot_dimension_numbers<[1], [0], [0], [1], [0, 0, 1, 1], [], []>} : vector<2x32xf32>, vector<32x96xf32>, vector<2x96xf32> -> vector<2x96xf32>
    %163 = vector.extract_strided_slice %159 {offsets = [0, 0], sizes = [2, 32], strides = [1, 1]} : vector<2x96xf32> to vector<2x32xf32>
    %164 = vector.extract_strided_slice %162 {offsets = [0, 0], sizes = [2, 32], strides = [1, 1]} : vector<2x96xf32> to vector<2x32xf32>
    %165 = arith.addf %163, %164 : vector<2x32xf32>
    %166 = arith.negf %165 : vector<2x32xf32>
    %167 = math.exp %166 : vector<2x32xf32>
    %cst_58 = arith.constant 1.000000e+00 : f32
    %168 = vector.broadcast %cst_58 : f32 to vector<2x32xf32>
    %169 = arith.addf %168, %167 : vector<2x32xf32>
    %170 = arith.divf %168, %169 : vector<2x32xf32>
    %171 = vector.extract_strided_slice %159 {offsets = [0, 32], sizes = [2, 32], strides = [1, 1]} : vector<2x96xf32> to vector<2x32xf32>
    %172 = vector.extract_strided_slice %162 {offsets = [0, 32], sizes = [2, 32], strides = [1, 1]} : vector<2x96xf32> to vector<2x32xf32>
    %173 = arith.addf %171, %172 : vector<2x32xf32>
    %174 = arith.negf %173 : vector<2x32xf32>
    %175 = math.exp %174 : vector<2x32xf32>
    %cst_59 = arith.constant 1.000000e+00 : f32
    %176 = vector.broadcast %cst_59 : f32 to vector<2x32xf32>
    %177 = arith.addf %176, %175 : vector<2x32xf32>
    %178 = arith.divf %176, %177 : vector<2x32xf32>
    %179 = vector.extract_strided_slice %159 {offsets = [0, 64], sizes = [2, 32], strides = [1, 1]} : vector<2x96xf32> to vector<2x32xf32>
    %180 = vector.extract_strided_slice %162 {offsets = [0, 64], sizes = [2, 32], strides = [1, 1]} : vector<2x96xf32> to vector<2x32xf32>
    %181 = arith.addf %180, %5 : vector<2x32xf32>
    %182 = arith.mulf %170, %181 : vector<2x32xf32>
    %183 = arith.addf %179, %182 : vector<2x32xf32>
    %184 = math.tanh %183 : vector<2x32xf32>
    %cst_60 = arith.constant 1.000000e+00 : f32
    %185 = vector.broadcast %cst_60 : f32 to vector<2x32xf32>
    %186 = arith.subf %185, %178 : vector<2x32xf32>
    %187 = arith.mulf %186, %184 : vector<2x32xf32>
    %188 = arith.mulf %178, %116 : vector<2x32xf32>
    %189 = arith.addf %187, %188 : vector<2x32xf32>
    %190 = vector.shape_cast %189 : vector<2x32xf32> to vector<1x2x32xf32>
    %191 = arith.index_cast %c2_i32 : i32 to index
    %c0_61 = arith.constant 0 : index
    %c0_62 = arith.constant 0 : index
    %192 = vector.load %arg6[%191, %c0_61, %c0_62] : memref<4x2x32xf32, #tpu.memory_space<vmem>>, vector<1x2x32xf32>
    tpu.vector_store %arg6[%191, %c0_61, %c0_62], %190 {strides = array<i32>} : memref<4x2x32xf32, #tpu.memory_space<vmem>>, vector<1x2x32xf32>,
    %c3_i32_63 = arith.constant 3 : i32
    %193 = arith.subi %c3_i32_63, %c2_i32 : i32
    %194 = arith.index_cast %193 : i32 to index
    %c0_64 = arith.constant 0 : index
    %c0_65 = arith.constant 0 : index
    %195 = vector.load %arg2[%194, %c0_64, %c0_65] : memref<4x2x96xf32, #tpu.memory_space<vmem>>, vector<1x2x96xf32>
    %196 = vector.shape_cast %195 : vector<1x2x96xf32> to vector<2x96xf32>
    %c1_66 = arith.constant 1 : index
    %c0_67 = arith.constant 0 : index
    %c0_68 = arith.constant 0 : index
    %197 = vector.load %arg8[%c1_66, %c0_67, %c0_68] : memref<2x32x96xf32, #tpu.memory_space<vmem>>, vector<1x32x96xf32>
    %198 = vector.shape_cast %197 : vector<1x32x96xf32> to vector<32x96xf32>
    %cst_69 = arith.constant dense<0.000000e+00> : vector<2x96xf32>
    %199 = tpu.matmul %153, %198, %cst_69 {dimension_numbers = #tpu.dot_dimension_numbers<[1], [0], [0], [1], [0, 0, 1, 1], [], []>} : vector<2x32xf32>, vector<32x96xf32>, vector<2x96xf32> -> vector<2x96xf32>
    %200 = vector.extract_strided_slice %196 {offsets = [0, 0], sizes = [2, 32], strides = [1, 1]} : vector<2x96xf32> to vector<2x32xf32>
    %201 = vector.extract_strided_slice %199 {offsets = [0, 0], sizes = [2, 32], strides = [1, 1]} : vector<2x96xf32> to vector<2x32xf32>
    %202 = arith.addf %200, %201 : vector<2x32xf32>
    %203 = arith.negf %202 : vector<2x32xf32>
    %204 = math.exp %203 : vector<2x32xf32>
    %cst_70 = arith.constant 1.000000e+00 : f32
    %205 = vector.broadcast %cst_70 : f32 to vector<2x32xf32>
    %206 = arith.addf %205, %204 : vector<2x32xf32>
    %207 = arith.divf %205, %206 : vector<2x32xf32>
    %208 = vector.extract_strided_slice %196 {offsets = [0, 32], sizes = [2, 32], strides = [1, 1]} : vector<2x96xf32> to vector<2x32xf32>
    %209 = vector.extract_strided_slice %199 {offsets = [0, 32], sizes = [2, 32], strides = [1, 1]} : vector<2x96xf32> to vector<2x32xf32>
    %210 = arith.addf %208, %209 : vector<2x32xf32>
    %211 = arith.negf %210 : vector<2x32xf32>
    %212 = math.exp %211 : vector<2x32xf32>
    %cst_71 = arith.constant 1.000000e+00 : f32
    %213 = vector.broadcast %cst_71 : f32 to vector<2x32xf32>
    %214 = arith.addf %213, %212 : vector<2x32xf32>
    %215 = arith.divf %213, %214 : vector<2x32xf32>
    %216 = vector.extract_strided_slice %196 {offsets = [0, 64], sizes = [2, 32], strides = [1, 1]} : vector<2x96xf32> to vector<2x32xf32>
    %217 = vector.extract_strided_slice %199 {offsets = [0, 64], sizes = [2, 32], strides = [1, 1]} : vector<2x96xf32> to vector<2x32xf32>
    %218 = arith.addf %217, %8 : vector<2x32xf32>
    %219 = arith.mulf %207, %218 : vector<2x32xf32>
    %220 = arith.addf %216, %219 : vector<2x32xf32>
    %221 = math.tanh %220 : vector<2x32xf32>
    %cst_72 = arith.constant 1.000000e+00 : f32
    %222 = vector.broadcast %cst_72 : f32 to vector<2x32xf32>
    %223 = arith.subf %222, %215 : vector<2x32xf32>
    %224 = arith.mulf %223, %221 : vector<2x32xf32>
    %225 = arith.mulf %215, %153 : vector<2x32xf32>
    %226 = arith.addf %224, %225 : vector<2x32xf32>
    %227 = vector.shape_cast %226 : vector<2x32xf32> to vector<1x2x32xf32>
    %228 = arith.index_cast %193 : i32 to index
    %c0_73 = arith.constant 0 : index
    %c0_74 = arith.constant 0 : index
    %229 = vector.load %arg7[%228, %c0_73, %c0_74] : memref<4x2x32xf32, #tpu.memory_space<vmem>>, vector<1x2x32xf32>
    tpu.vector_store %arg7[%228, %c0_73, %c0_74], %227 {strides = array<i32>} : memref<4x2x32xf32, #tpu.memory_space<vmem>>, vector<1x2x32xf32>,
    %c3_i32_75 = arith.constant 3 : i32
    %230 = arith.index_cast %c3_i32_75 : i32 to index
    %c0_76 = arith.constant 0 : index
    %c0_77 = arith.constant 0 : index
    %231 = vector.load %arg1[%230, %c0_76, %c0_77] : memref<4x2x96xf32, #tpu.memory_space<vmem>>, vector<1x2x96xf32>
    %232 = vector.shape_cast %231 : vector<1x2x96xf32> to vector<2x96xf32>
    %c0_78 = arith.constant 0 : index
    %c0_79 = arith.constant 0 : index
    %c0_80 = arith.constant 0 : index
    %233 = vector.load %arg8[%c0_78, %c0_79, %c0_80] : memref<2x32x96xf32, #tpu.memory_space<vmem>>, vector<1x32x96xf32>
    %234 = vector.shape_cast %233 : vector<1x32x96xf32> to vector<32x96xf32>
    %cst_81 = arith.constant dense<0.000000e+00> : vector<2x96xf32>
    %235 = tpu.matmul %189, %234, %cst_81 {dimension_numbers = #tpu.dot_dimension_numbers<[1], [0], [0], [1], [0, 0, 1, 1], [], []>} : vector<2x32xf32>, vector<32x96xf32>, vector<2x96xf32> -> vector<2x96xf32>
    %236 = vector.extract_strided_slice %232 {offsets = [0, 0], sizes = [2, 32], strides = [1, 1]} : vector<2x96xf32> to vector<2x32xf32>
    %237 = vector.extract_strided_slice %235 {offsets = [0, 0], sizes = [2, 32], strides = [1, 1]} : vector<2x96xf32> to vector<2x32xf32>
    %238 = arith.addf %236, %237 : vector<2x32xf32>
    %239 = arith.negf %238 : vector<2x32xf32>
    %240 = math.exp %239 : vector<2x32xf32>
    %cst_82 = arith.constant 1.000000e+00 : f32
    %241 = vector.broadcast %cst_82 : f32 to vector<2x32xf32>
    %242 = arith.addf %241, %240 : vector<2x32xf32>
    %243 = arith.divf %241, %242 : vector<2x32xf32>
    %244 = vector.extract_strided_slice %232 {offsets = [0, 32], sizes = [2, 32], strides = [1, 1]} : vector<2x96xf32> to vector<2x32xf32>
    %245 = vector.extract_strided_slice %235 {offsets = [0, 32], sizes = [2, 32], strides = [1, 1]} : vector<2x96xf32> to vector<2x32xf32>
    %246 = arith.addf %244, %245 : vector<2x32xf32>
    %247 = arith.negf %246 : vector<2x32xf32>
    %248 = math.exp %247 : vector<2x32xf32>
    %cst_83 = arith.constant 1.000000e+00 : f32
    %249 = vector.broadcast %cst_83 : f32 to vector<2x32xf32>
    %250 = arith.addf %249, %248 : vector<2x32xf32>
    %251 = arith.divf %249, %250 : vector<2x32xf32>
    %252 = vector.extract_strided_slice %232 {offsets = [0, 64], sizes = [2, 32], strides = [1, 1]} : vector<2x96xf32> to vector<2x32xf32>
    %253 = vector.extract_strided_slice %235 {offsets = [0, 64], sizes = [2, 32], strides = [1, 1]} : vector<2x96xf32> to vector<2x32xf32>
    %254 = arith.addf %253, %5 : vector<2x32xf32>
    %255 = arith.mulf %243, %254 : vector<2x32xf32>
    %256 = arith.addf %252, %255 : vector<2x32xf32>
    %257 = math.tanh %256 : vector<2x32xf32>
    %cst_84 = arith.constant 1.000000e+00 : f32
    %258 = vector.broadcast %cst_84 : f32 to vector<2x32xf32>
    %259 = arith.subf %258, %251 : vector<2x32xf32>
    %260 = arith.mulf %259, %257 : vector<2x32xf32>
    %261 = arith.mulf %251, %189 : vector<2x32xf32>
    %262 = arith.addf %260, %261 : vector<2x32xf32>
    %263 = vector.shape_cast %262 : vector<2x32xf32> to vector<1x2x32xf32>
    %264 = arith.index_cast %c3_i32_75 : i32 to index
    %c0_85 = arith.constant 0 : index
    %c0_86 = arith.constant 0 : index
    %265 = vector.load %arg6[%264, %c0_85, %c0_86] : memref<4x2x32xf32, #tpu.memory_space<vmem>>, vector<1x2x32xf32>
    tpu.vector_store %arg6[%264, %c0_85, %c0_86], %263 {strides = array<i32>} : memref<4x2x32xf32, #tpu.memory_space<vmem>>, vector<1x2x32xf32>,
    %c3_i32_87 = arith.constant 3 : i32
    %266 = arith.subi %c3_i32_87, %c3_i32_75 : i32
    %267 = arith.index_cast %266 : i32 to index
    %c0_88 = arith.constant 0 : index
    %c0_89 = arith.constant 0 : index
    %268 = vector.load %arg2[%267, %c0_88, %c0_89] : memref<4x2x96xf32, #tpu.memory_space<vmem>>, vector<1x2x96xf32>
    %269 = vector.shape_cast %268 : vector<1x2x96xf32> to vector<2x96xf32>
    %c1_90 = arith.constant 1 : index
    %c0_91 = arith.constant 0 : index
    %c0_92 = arith.constant 0 : index
    %270 = vector.load %arg8[%c1_90, %c0_91, %c0_92] : memref<2x32x96xf32, #tpu.memory_space<vmem>>, vector<1x32x96xf32>
    %271 = vector.shape_cast %270 : vector<1x32x96xf32> to vector<32x96xf32>
    %cst_93 = arith.constant dense<0.000000e+00> : vector<2x96xf32>
    %272 = tpu.matmul %226, %271, %cst_93 {dimension_numbers = #tpu.dot_dimension_numbers<[1], [0], [0], [1], [0, 0, 1, 1], [], []>} : vector<2x32xf32>, vector<32x96xf32>, vector<2x96xf32> -> vector<2x96xf32>
    %273 = vector.extract_strided_slice %269 {offsets = [0, 0], sizes = [2, 32], strides = [1, 1]} : vector<2x96xf32> to vector<2x32xf32>
    %274 = vector.extract_strided_slice %272 {offsets = [0, 0], sizes = [2, 32], strides = [1, 1]} : vector<2x96xf32> to vector<2x32xf32>
    %275 = arith.addf %273, %274 : vector<2x32xf32>
    %276 = arith.negf %275 : vector<2x32xf32>
    %277 = math.exp %276 : vector<2x32xf32>
    %cst_94 = arith.constant 1.000000e+00 : f32
    %278 = vector.broadcast %cst_94 : f32 to vector<2x32xf32>
    %279 = arith.addf %278, %277 : vector<2x32xf32>
    %280 = arith.divf %278, %279 : vector<2x32xf32>
    %281 = vector.extract_strided_slice %269 {offsets = [0, 32], sizes = [2, 32], strides = [1, 1]} : vector<2x96xf32> to vector<2x32xf32>
    %282 = vector.extract_strided_slice %272 {offsets = [0, 32], sizes = [2, 32], strides = [1, 1]} : vector<2x96xf32> to vector<2x32xf32>
    %283 = arith.addf %281, %282 : vector<2x32xf32>
    %284 = arith.negf %283 : vector<2x32xf32>
    %285 = math.exp %284 : vector<2x32xf32>
    %cst_95 = arith.constant 1.000000e+00 : f32
    %286 = vector.broadcast %cst_95 : f32 to vector<2x32xf32>
    %287 = arith.addf %286, %285 : vector<2x32xf32>
    %288 = arith.divf %286, %287 : vector<2x32xf32>
    %289 = vector.extract_strided_slice %269 {offsets = [0, 64], sizes = [2, 32], strides = [1, 1]} : vector<2x96xf32> to vector<2x32xf32>
    %290 = vector.extract_strided_slice %272 {offsets = [0, 64], sizes = [2, 32], strides = [1, 1]} : vector<2x96xf32> to vector<2x32xf32>
    %291 = arith.addf %290, %8 : vector<2x32xf32>
    %292 = arith.mulf %280, %291 : vector<2x32xf32>
    %293 = arith.addf %289, %292 : vector<2x32xf32>
    %294 = math.tanh %293 : vector<2x32xf32>
    %cst_96 = arith.constant 1.000000e+00 : f32
    %295 = vector.broadcast %cst_96 : f32 to vector<2x32xf32>
    %296 = arith.subf %295, %288 : vector<2x32xf32>
    %297 = arith.mulf %296, %294 : vector<2x32xf32>
    %298 = arith.mulf %288, %226 : vector<2x32xf32>
    %299 = arith.addf %297, %298 : vector<2x32xf32>
    %300 = vector.shape_cast %299 : vector<2x32xf32> to vector<1x2x32xf32>
    %301 = arith.index_cast %266 : i32 to index
    %c0_97 = arith.constant 0 : index
    %c0_98 = arith.constant 0 : index
    %302 = vector.load %arg7[%301, %c0_97, %c0_98] : memref<4x2x32xf32, #tpu.memory_space<vmem>>, vector<1x2x32xf32>
    tpu.vector_store %arg7[%301, %c0_97, %c0_98], %300 {strides = array<i32>} : memref<4x2x32xf32, #tpu.memory_space<vmem>>, vector<1x2x32xf32>,
    %c4_i32 = arith.constant 4 : i32
    %c0_99 = arith.constant 0 : index
    %c0_100 = arith.constant 0 : index
    %303 = vector.load %arg10[%c0_99, %c0_100] : memref<2x32xf32, #tpu.memory_space<vmem>>, vector<2x32xf32>
    tpu.vector_store %arg10[%c0_99, %c0_100], %262 {strides = array<i32>} : memref<2x32xf32, #tpu.memory_space<vmem>>, vector<2x32xf32>,
    %c0_101 = arith.constant 0 : index
    %c0_102 = arith.constant 0 : index
    %304 = vector.load %arg11[%c0_101, %c0_102] : memref<2x32xf32, #tpu.memory_space<vmem>>, vector<2x32xf32>
    tpu.vector_store %arg11[%c0_101, %c0_102], %299 {strides = array<i32>} : memref<2x32xf32, #tpu.memory_space<vmem>>, vector<2x32xf32>,
    return
  }
  func.func @transform_0(%arg0: i32) -> (i32, i32, i32) {
    %c0_i32 = arith.constant 0 : i32
    %c0_i32_0 = arith.constant 0 : i32
    %c0_i32_1 = arith.constant 0 : i32
    return %arg0, %c0_i32, %c0_i32_0 : i32, i32, i32
  }
  func.func @transform_1(%arg0: i32) -> (i32, i32, i32) {
    %c1_i32 = arith.constant 1 : i32
    %0 = arith.subi %c1_i32, %arg0 : i32
    %c0_i32 = arith.constant 0 : i32
    %c0_i32_0 = arith.constant 0 : i32
    %c0_i32_1 = arith.constant 0 : i32
    return %0, %c0_i32, %c0_i32_0 : i32, i32, i32
  }
  func.func @transform_2(%arg0: i32) -> (i32, i32) {
    %c0_i32 = arith.constant 0 : i32
    %c0_i32_0 = arith.constant 0 : i32
    %c0_i32_1 = arith.constant 0 : i32
    return %c0_i32, %c0_i32_0 : i32, i32
  }
  func.func @transform_3(%arg0: i32) -> (i32, i32) {
    %c0_i32 = arith.constant 0 : i32
    %c0_i32_0 = arith.constant 0 : i32
    %c0_i32_1 = arith.constant 0 : i32
    return %c0_i32, %c0_i32_0 : i32, i32
  }
  func.func @transform_5(%arg0: i32) -> (i32, i32, i32) {
    %c0_i32 = arith.constant 0 : i32
    %c0_i32_0 = arith.constant 0 : i32
    %c0_i32_1 = arith.constant 0 : i32
    return %arg0, %c0_i32, %c0_i32_0 : i32, i32, i32
  }
  func.func @transform_6(%arg0: i32) -> (i32, i32, i32) {
    %c1_i32 = arith.constant 1 : i32
    %0 = arith.subi %c1_i32, %arg0 : i32
    %c0_i32 = arith.constant 0 : i32
    %c0_i32_0 = arith.constant 0 : i32
    %c0_i32_1 = arith.constant 0 : i32
    return %0, %c0_i32, %c0_i32_0 : i32, i32, i32
  }
}

</mosaic_0001>

<bundles_post_ra>
// kernel: tpu_custom_call.1
= control target key start
LH: loop header
LB: loop body
LE: loop exit
PB: predicated region body
PF: predicated region fallthrough
CT: control target
= control target key end

     0   :  { %s2773_s0 = inlined_call_operand.hbm [shape: f32[8,2,96], index: 0, kind: input, shape index: {}]   ;;  %s2774_s1 = inlined_call_operand.hbm [shape: f32[8,2,96], index: 1, kind: input, shape index: {}]   ;;  %s2775_s2 = inlined_call_operand.hbm [shape: f32[1,32], index: 2, kind: input, shape index: {}]   ;;  %s2776_s3 = inlined_call_operand.hbm [shape: f32[1,32], index: 3, kind: input, shape index: {}]   ;;  %s2777_s4 = inlined_call_operand.hbm [shape: f32[2,32,96], index: 4, kind: input, shape index: {}]   ;;  %s2778_s5 = inlined_call_operand.hbm [shape: f32[8,2,32], index: 5, kind: output, shape index: {0}]   ;;  %s2779_s6 = inlined_call_operand.hbm [shape: f32[8,2,32], index: 6, kind: output, shape index: {1}]  }
   0x1   :  { %2794 = sst [smem:[#allocation32_spill]] %s2773_s0 }
   0x2   :  { %2795 = sst [smem:[#allocation33_spill]] %s2775_s2 }
   0x3   :  { %2796 = sst [smem:[#allocation34_spill]] %s2776_s3 }
   0x4   :  { %2797 = sst [smem:[#allocation35_spill]] %s2779_s6 }
   0x5   :  { %12 = vsyncpa [#allocation7], 0 }
   0x6   :  { %14 = vsyncpa [#allocation7 + $0x1], 0 }
   0x7   :  { %15 = vsyncpa [#allocation10], 0 }
   0x8   :  { %17 = vsyncpa [#allocation10 + $0x1], 0 }
   0x9   :  { %18 = vsyncpa [#allocation13], 0 }
   0xa   :  { %19 = vsyncpa [#allocation8], 0 }
   0xb   :  { %21 = vsyncpa [#allocation8 + $0x1], 0 }
   0xc   :  { %22 = vsyncpa [#allocation16], 0 }
   0xd   :  { %24 = vsyncpa [#allocation16 + $0x1], 0  ;;  %s2185_s21 = smov 0   ;;  %s2187_s22 = smov 0  }
   0xe   :  { %s2189_s23 = smov 0   ;;  %s2191_s24 = smov 0  }
   0xf   :  { %s2193_s25 = smov 0   ;;  %s2195_s26 = smov 0  }
  0x10   :  { %s2197_s27 = smov 0  }
  0x11 LB: > { %2798 = sst [smem:[#allocation28_spill]] %s2107_s21  ;;  %s2221_s28 = sadd.s32 4294967295, %s2131_s27   ;;  %s2131_s27 = sphi %s2197_s27, %s2852_s27   ;;  %s2127_s26 = sphi %s2195_s26, %s2851_s26   ;;  %s2123_s25 = sphi %s2193_s25, %s2850_s25   ;;  %s2119_s24 = sphi %s2191_s24, %s2849_s24   ;;  %s2115_s23 = sphi %s2189_s23, %s2848_s23   ;;  %s2111_s22 = sphi %s2187_s22, %s2847_s22   ;;  %s2107_s21 = sphi %s2185_s21, %s2846_s21  }
  0x12   : > { %2799 = sst [smem:[#allocation29_spill]] %s2119_s24  ;;  %s1459_s29 = sadd.s32 4294967294, %s2131_s27  }
  0x13   : > { %p2780_p0 = scmp.eq.s32.totalorder %s2131_s27, 0  ;;  %p50_p1 = scmp.ne.s32.totalorder %s2123_s25, %s2119_s24 }
  0x14   : > { %p2781_p2 = scmp.eq.s32.totalorder %s2221_s28, 0  ;;  %p72_p3 = scmp.ne.s32.totalorder %s2115_s23, %s2111_s22 }
  0x15   : > { %p78_p4 = scmp.ne.s32.totalorder %s2111_s22, %s2107_s21  ;;  %p2785_p5 = scmp.eq.s32.totalorder %s2221_s28, 1 }
  0x16   : > { %p2235_p6 = por %p2781_p2, %p50_p1  ;;  %p2241_p7 = por %p72_p3, %p2780_p0 }
  0x17   : > { %p2247_p8 = por %p78_p4, %p2781_p2  ;;  %p150_p9 = scmp.eq.s32.totalorder %s1459_s29, 1 }
  0x18   : > { %s2800_s30 = scalar_select %p2235_p6, 1, 0 }
  0x19   : > { %s2801_s7 = scalar_select %p2241_p7, 1, 0 }
  0x1a   : > { %s2802_s8 = scalar_select %p2247_p8, 1, 0 }
  0x1b   : > { %p2253_p10 = por %p2785_p5, %p72_p3  ;;  %p1460_p11 = scmp.ge.s32.totalorder %s2131_s27, 1 }
  0x1c   : > { %p2258_p12 = por %p150_p9, %p50_p1  ;;  %p2262_p13 = por %p150_p9, %p78_p4 }
  0x1d   : > { %s2803_s9 = scalar_select %p2253_p10, 1, 0 }
  0x1e   : > { %s2804_s10 = scalar_select %p2258_p12, 1, 0 }
  0x1f   : > { %s2806_s11 = scalar_select %p2262_p13, 1, 0 }
  0x20   : > { %2805 = sst [smem:[#allocation30_spill]] %s2804_s10  ;;  %p185_p0 = scmp.lt.s32.totalorder %s2131_s27, 3 }
  0x21   : > { %2807 = sst [smem:[#allocation31_spill]] %s2806_s11  ;;  %s2133_s13 = smov [#allocation11]  }
  0x22   : > { %p2269_p3 = pnand %p1460_p11, %p185_p0  ;;  %s198_s14 = sshll.u32 %s2133_s13, 4  ;;  %s199_s14 = int_to_ptr.vmem [resolvable:$true] %s198_s14 }
  0x23   : > { %s2134_s15 = smov [#allocation12]   ;;  %p2809_p4 = scmp.eq.s32.totalorder %s2221_s28, 0 }
  0x24   : > { %s2808_s12 = scalar_select %p2269_p3, 1, 0 }
  0x25   : > { %p1713_p1 = pneg %p2269_p3  ;;  %s209_s16 = sshll.u32 %s2134_s15, 4  ;;  %s2275_s16 = int_to_ptr.vmem [resolvable:$true] %s209_s16 }
  0x26   : > { %s2811_s2 = sld [smem:[#allocation33_spill]] }
  0x27   : > { %p2279_p9 = pnand %p1713_p1, %p2809_p4 }
  0x29   : > { %p1859_p2 = pneg %p2279_p9 }
  0x2c   : > { %s1857_s29 = scalar_lea.hbm %s2811_s2, 16 }
  0x2d   : > { %p1858_p8 = scmp.ne.s32.totalorder %s2811_s2, %s1857_s29  ;;  %p1864_p5 = scmp.lt.u32.totalorder %s1857_s29, %s2811_s2 }
  0x2f   : > { %p1860_p1 = pnand %p1859_p2, %p1858_p8 }
  0x31   : > { %p1861_p4 = pneg %p1860_p1 }
  0x33   : > { %p1866_p0 = pnand %p1864_p5, %p1861_p4 }
  0x35   : > { %1869 = shalt.err (!%p1866_p0)
}
  0x36   : > { %s1870_s18 = scalar_lea.vmem %s199_s14, 16  ;;  %s1877_s11 = scalar_lea.vmem %s199_s14, 32 }
  0x37   : > { %p1871_p11 = scmp.ne.s32.totalorder %s199_s14, %s1870_s18  ;;  %p1878_p10 = scmp.lt.s32.totalorder %s199_s14, %s199_s14 }
  0x38   : > { %p1879_p6 = scmp.lt.s32.totalorder %s1877_s11, %s1870_s18 }
  0x39   : > { %p1873_p13 = pnand %p1871_p11, %p1859_p2 }
  0x3a   : > { %p1880_p3 = por %p1879_p6, %p1878_p10 }
  0x3b   : > { %p1874_p12 = pneg %p1873_p13 }
  0x3d   : > { %p1881_p7 = pnand %p1880_p3, %p1874_p12 }
  0x3f   : > { %1884 = shalt.err (!%p1881_p7)
}
  0x40   : > { %1716 = dma.hbm_to_vmem [thread:$0]  (!%p2279_p9), %s2811_s2, 16, %s199_s14, [#allocation10]  }
  0x41   : > { %s2812_s3 = sld [smem:[#allocation34_spill]] }
  0x47   : > { %s1885_s13 = scalar_lea.hbm %s2812_s3, 16 }
  0x48   : > { %p1886_p5 = scmp.ne.s32.totalorder %s2812_s3, %s1885_s13  ;;  %p1892_p7 = scmp.lt.u32.totalorder %s1885_s13, %s2812_s3 }
  0x4a   : > { %p1888_p6 = pnand %p1886_p5, %p1859_p2 }
  0x4c   : > { %p1889_p8 = pneg %p1888_p6 }
  0x4e   : > { %p1894_p10 = pnand %p1892_p7, %p1889_p8 }
  0x50   : > { %1897 = shalt.err (!%p1894_p10)
}
  0x51   : > { %s1898_s14 = scalar_lea.vmem %s2275_s16, 16  ;;  %s1905_s10 = scalar_lea.vmem %s2275_s16, 32 }
  0x52   : > { %p1899_p12 = scmp.ne.s32.totalorder %s2275_s16, %s1898_s14  ;;  %p1906_p0 = scmp.lt.s32.totalorder %s2275_s16, %s2275_s16 }
  0x53   : > { %p1907_p11 = scmp.lt.s32.totalorder %s1905_s10, %s1898_s14 }
  0x54   : > { %p1901_p13 = pnand %p1899_p12, %p1859_p2 }
  0x55   : > { %p1908_p1 = por %p1907_p11, %p1906_p0 }
  0x56   : > { %p1902_p3 = pneg %p1901_p13 }
  0x58   : > { %p1909_p4 = pnand %p1908_p1, %p1902_p3 }
  0x5a   : > { %1912 = shalt.err (!%p1909_p4)
}
  0x5b   : > { %1719 = dma.hbm_to_vmem [thread:$0]  (!%p2279_p9), %s2812_s3, 16, %s2275_s16, [#allocation13]  }
  0x5c   : > { %p2813_p2 = scmp.ne.s32.totalorder %s2127_s26, %s2123_s25  ;;  %p2814_p5 = scmp.eq.s32.totalorder %s2131_s27, 0 }
  0x5d   : > { %p2816_p7 = scmp.eq.s32.totalorder %s2221_s28, 1  ;;  %s220_s20 = sand.u32 1, %s2127_s26  }
  0x5e   : > { %p46_p6 = por %p2814_p5, %p2813_p2  ;;  %p2815_p8 = pmov %p2813_p2 }
  0x5f   : > { %s1517_s29 = sshll.u32 %s2131_s27, 7  ;;  %s1464_s13 = sshll.u32 %s220_s20, 3 }
  0x60   : > { %p2345_p10 = por %p2816_p7, %p2815_p8  ;;  %s2818_s0 = sld [smem:[#allocation32_spill]] }
  0x61   : > { %s224_s16 = scalar_lea.vmem [#allocation6], %s1464_s13  ;;  %p2819_p9 = scmp.lt.s32.totalorder %s2131_s27, 2 }
  0x62   : > { %s231_s14 = sshll.u32 %s224_s16, 4  ;;  %s2364_s19 = scalar_lea.sflag [#allocation7], %s220_s20  ;;  %s2362_s14 = int_to_ptr.vmem [resolvable:$true] %s231_s14 }
  0x63   : > { %p2358_p12 = pnand %p2819_p9, %p46_p6 }
  0x65   : > { %p1915_p3 = pneg %p2358_p12 }
  0x66   : > { %s2354_s11 = scalar_lea.hbm %s2818_s0, %s1517_s29  ;;  %s1918_s15 = scalar_lea.hbm %s2818_s0, 256 }
  0x67   : > { %s1913_s21 = scalar_lea.hbm %s2354_s11, 128  ;;  %p1919_p1 = scmp.lt.u32.totalorder %s2354_s11, %s2818_s0 }
  0x68   : > { %p1914_p13 = scmp.ne.s32.totalorder %s2354_s11, %s1913_s21  ;;  %p1920_p4 = scmp.lt.u32.totalorder %s1918_s15, %s1913_s21 }
  0x69   : > { %p1922_p5 = scmp.lt.u32.totalorder %s1913_s21, %s2354_s11 }
  0x6a   : > { %p1916_p0 = pnand %p1915_p3, %p1914_p13  ;;  %p1921_p2 = por %p1920_p4, %p1919_p1 }
  0x6c   : > { %p1917_p11 = pneg %p1916_p0  ;;  %p1923_p6 = por %p1922_p5, %p1921_p2 }
  0x6e   : > { %p1924_p8 = pnand %p1923_p6, %p1917_p11 }
  0x70   : > { %1927 = shalt.err (!%p1924_p8)
}
  0x71   : > { %s1928_s20 = scalar_lea.vmem %s2362_s14, 128  ;;  %s2135_s29 = smov [#allocation6]  }
  0x72   : > { %p1929_p7 = scmp.ne.s32.totalorder %s2362_s14, %s1928_s20  ;;  %s1933_s13 = sshll.u32 %s2135_s29, 4  ;;  %s1934_s13 = int_to_ptr.vmem [resolvable:$false] %s1933_s13 }
  0x73   : > { %s1935_s18 = scalar_lea.vmem %s1934_s13, 256  ;;  %p1936_p0 = scmp.lt.s32.totalorder %s2362_s14, %s1934_s13 }
  0x74   : > { %p1931_p9 = pnand %p1929_p7, %p1915_p3  ;;  %p1937_p1 = scmp.lt.s32.totalorder %s1935_s18, %s1928_s20 }
  0x76   : > { %p1932_p13 = pneg %p1931_p9  ;;  %p1938_p4 = por %p1937_p1, %p1936_p0 }
  0x78   : > { %p1939_p2 = pnand %p1938_p4, %p1932_p13 }
  0x7a   : > { %1942 = shalt.err (!%p1939_p2)
}
  0x7b   : > { %s2790_s21 = smov 32   ;;  %s2791_s15 = smov 2  }
  0x7c   : > { %1723 = dma.hbm_to_vmem [thread:$0]  (!%p2358_p12), %s2354_s11, 128, %s2362_s14, %s2364_s19, %s2790_s21, %s2790_s21, %s2791_s15  }
  0x7d   : > { %p2821_p3 = scmp.ne.s32.totalorder %s2801_s7, 0  ;;  %p2822_p11 = scmp.lt.s32.totalorder %s2131_s27, 2 }
  0x7e   : > { %s2404_s20 = sadd.s32 1, %s2131_s27   ;;  %s60_s13 = ssub.s32 1, %s2131_s27 }
  0x7f   : > { %p2399_p5 = pnand %p2822_p11, %p2821_p3  ;;  %s34_s29 = ssub.s32 %s2131_s27, %s2404_s20 }
  0x80   : > { %p35_p6 = scmp.eq.s32.totalorder %s34_s29, 0  ;;  %s61_s18 = ssub.s32 1, %s2404_s20 }
  0x81   : > { %s2824_s0 = sadd.s32 1, %s2127_s26  ;;  %s62_s2 = ssub.s32 %s60_s13, %s61_s18 }
  0x82   : > { %s2413_s10 = scalar_select %p35_p6, %s2127_s26, %s2824_s0  }
  0x83   : > { %s65_s7 = sadd.s32 1, %s2115_s23  ;;  %p63_p12 = scmp.eq.s32.totalorder %s62_s2, 0 }
  0x84   : > { %s241_s11 = sand.u32 1, %s2131_s27   ;;  %s243_s14 = sand.u32 1, %s2115_s23  }
  0x85   : > { %s1518_s19 = sshll.u32 %s60_s13, 7  ;;  %s1467_s15 = sshll.u32 %s243_s14, 3 }
  0x86   : > { %s2419_s21 = scalar_select %p63_p12, %s2115_s23, %s65_s7  }
  0x87   : > { %s2424_s6 = scalar_lea.hbm %s2774_s1, %s1518_s19  ;;  %s245_s0 = scalar_lea.vmem [#allocation9], %s1467_s15 }
  0x88   : > { %s253_s29 = sshll.u32 %s245_s0, 4  ;;  %s2428_s2 = scalar_lea.sflag [#allocation10], %s241_s11  ;;  %s2426_s29 = int_to_ptr.vmem [resolvable:$true] %s253_s29 }
  0x89   : > { %s1943_s18 = scalar_lea.hbm %s2424_s6, 128  ;;  %p1945_p7 = pneg %p2399_p5 }
  0x8a   : > { %p1944_p8 = scmp.ne.s32.totalorder %s2424_s6, %s1943_s18  ;;  %s1948_s13 = scalar_lea.hbm %s2774_s1, 256 }
  0x8b   : > { %p1949_p0 = scmp.lt.u32.totalorder %s2424_s6, %s2774_s1  ;;  %p1950_p1 = scmp.lt.u32.totalorder %s1948_s13, %s1943_s18 }
  0x8c   : > { %p1946_p9 = pnand %p1945_p7, %p1944_p8  ;;  %p1952_p2 = scmp.lt.u32.totalorder %s1943_s18, %s2424_s6 }
  0x8d   : > { %p1951_p4 = por %p1950_p1, %p1949_p0 }
  0x8e   : > { %p1947_p13 = pneg %p1946_p9 }
  0x8f   : > { %p1953_p3 = por %p1952_p2, %p1951_p4 }
  0x91   : > { %p1954_p11 = pnand %p1953_p3, %p1947_p13 }
  0x93   : > { %1957 = shalt.err (!%p1954_p11)
}
  0x94   : > { %s1958_s15 = scalar_lea.vmem %s2426_s29, 128  ;;  %s2138_s11 = smov [#allocation9]  }
  0x95   : > { %p1959_p6 = scmp.ne.s32.totalorder %s2426_s29, %s1958_s15  ;;  %s1963_s19 = sshll.u32 %s2138_s11, 4  ;;  %s1964_s19 = int_to_ptr.vmem [resolvable:$false] %s1963_s19 }
  0x96   : > { %s1965_s0 = scalar_lea.vmem %s1964_s19, 256  ;;  %p1966_p9 = scmp.lt.s32.totalorder %s2426_s29, %s1964_s19 }
  0x97   : > { %p1961_p12 = pnand %p1959_p6, %p1945_p7  ;;  %p1967_p0 = scmp.lt.s32.totalorder %s1965_s0, %s1958_s15 }
  0x99   : > { %p1962_p8 = pneg %p1961_p12  ;;  %p1968_p1 = por %p1967_p0, %p1966_p9 }
  0x9b   : > { %p1969_p4 = pnand %p1968_p1, %p1962_p8 }
  0x9d   : > { %1972 = shalt.err (!%p1969_p4)
}
  0x9e   : > { %s2825_s18 = smov 2   ;;  %s2826_s3 = smov 32  }
  0x9f   : > { %1726 = dma.hbm_to_vmem [thread:$0]  (!%p2399_p5), %s2424_s6, 128, %s2426_s29, %s2428_s2, %s2826_s3, %s2826_s3, %s2825_s18  }
  0xa0   : > { %p2827_p7 = scmp.ne.s32.totalorder %s2808_s12, 0 }
  0xa1   : > { %s2462_s24 = sand.u32 (!%p2827_p7), 1, %s2123_s25   ;;  %p2828_p13 = scmp.ne.s32.totalorder (!%p2827_p7), %s2800_s30, 0 }
  0xa2   : > { %265 = sbr.rel (%p2827_p7) target bundleno = 3025 (0xbd1), region = 36  ;;  %s1471_s13 = sshll.u32 (!%p2827_p7), %s2462_s24, 3 }
  0xa3   : > { %s268_s7 = scalar_lea.sflag (!%p2827_p7), [#allocation7], %s2462_s24  ;;  %s2466_s14 = scalar_lea.vmem (!%p2827_p7), [#allocation6], %s1471_s13 }
  0xa9   : > { %2080 = dma.done.wait (%p2828_p13), %s268_s7, 128  }
  0xaa   : > { %2082 = vsyncadd (%p2828_p13), %s268_s7, 4294967168  ;;  %s276_s6 = sand.u32 1, %s2221_s28   ;;  %s278_s12 = sand.u32 1, %s2111_s22  }
  0xab   : > { %s1472_s16 = sshll.u32 %s278_s12, 3  ;;  %s277_s29 = scalar_lea.sflag [#allocation10], %s276_s6 }
  0xac   : > { %s2476_s2 = scalar_lea.vmem [#allocation9], %s1472_s16  ;;  %p2829_p5 = scmp.ne.s32.totalorder %s2802_s8, 0 }
  0xae   : > { %2084 = dma.done.wait (%p2829_p5), %s277_s29, 128  }
  0xaf   : > { %2086 = vsyncadd (%p2829_p5), %s277_s29, 4294967168  ;;  %p2830_p2 = scmp.eq.s32.totalorder %s2221_s28, 0 }
  0xb1   : > { %2088 = dma.done.wait (%p2830_p2), [#allocation10], 16   ;;  %p2831_p3 = pmov %p2830_p2 }
  0xb2   : > { %p2832_p11 = pmov %p2830_p2 }
  0xb3   : > { %2090 = vsyncadd (%p2831_p3), [#allocation10], 4294967280 }
  0xb4   : > { %2092 = dma.done.wait (%p2832_p11), [#allocation13], 16   ;;  %p2833_p6 = pmov %p2830_p2 }
  0xb5   : > { %s2490_s30 = scalar_lea.vmem [#allocation14], %s1471_s13  ;;  %s2492_s15 = scalar_lea.vmem [#allocation15], %s1472_s16 }
  0xb6   : > { %2094 = vsyncadd (%p2833_p6), [#allocation13], 4294967280  ;;  %p2834_p12 = scmp.ne.s32.totalorder %s2221_s28, 0 }
  0xb7   : > { %vm346_vm0 = vcmask (!%p2834_p12), 254976   ;;  %s2139_s8 = smov (!%p2834_p12), [#allocation2]   ;;  %v2140_v0 = vmov (!%p2834_p12), 0.0   ;;  %s1973_s18 = scalar_lea.hbm (!%p2834_p12), %s2777_s4, 1024 }
  0xb8   : > { %334 = sbr.rel (%p2834_p12) target bundleno = 203 (0xcb), region = 56  ;;  %s342_s11 = sshll.u32 (!%p2834_p12), %s2139_s8, 4  ;;  %347 = vst.msk [vmem:[#allocation4] sm:$0x3] (!%p2834_p12), %vm346_vm0, %v2140_v0  ;;  %348 = vst.msk [vmem:[#allocation5] sm:$0x3] (!%p2834_p12), %vm346_vm0, %v2140_v0  ;;  %s343_s11 = int_to_ptr.vmem [resolvable:$true] %s342_s11 }
  0xb9   : > { %p1974_p8 = scmp.ne.s32.totalorder (!%p2834_p12), %s2777_s4, %s1973_s18  ;;  %p1977_p9 = scmp.lt.u32.totalorder (!%p2834_p12), %s1973_s18, %s2777_s4 }
  0xbb   : > { %p1979_p0 = pnand (!%p2834_p12), %p1977_p9, %p1974_p8 }
  0xbf   : > { %1982 = shalt.err (!%p1979_p0)  }
  0xc0   : > { %s1983_s16 = scalar_lea.vmem %s343_s11, 1024  ;;  %p1988_p4 = scmp.lt.s32.totalorder %s343_s11, %s343_s11 }
  0xc1   : > { %p1984_p1 = scmp.ne.s32.totalorder %s343_s11, %s1983_s16  ;;  %p1989_p7 = scmp.lt.s32.totalorder %s1983_s16, %s1983_s16 }
  0xc3   : > { %p1990_p13 = por %p1989_p7, %p1988_p4 }
  0xc5   : > { %p1991_p5 = pnand %p1990_p13, %p1984_p1 }
  0xc7   : > { %1994 = shalt.err (!%p1991_p5)  }
  0xc8   : > { %345 = dma.hbm_to_vmem [thread:$0]  %s2777_s4, 1024, %s343_s11, [#allocation3] }
  0xc9   : > { %2095 = dma.done.wait [#allocation3], 1024 }
  0xca   : > { %2096 = vsyncadd [#allocation3], 4294966272 }
  0xcb PF: > { %v368_v1 = vld [vmem:[#allocation2] sm:$0xff]  ;;  %v369_v2 = vld [vmem:[#allocation2 + $0x8] sm:$0xff]  ;;  %v2141_v4 = vmov 0.0|0.0   ;;  %v370_v7 = vld [vmem:[#allocation2 + $0x10] sm:$0xff]  ;;  %vm2142_vm1 = vmmov 0   ;;  %v2143_v10 = vmov 0.0  }
  0xcc   : > { %v488_v3 = vld [vmem:[#allocation2 + $0x20] sm:$0xff]  ;;  %1649 = vmatprep.subr.bf16.mxu0 %v2141_v4  ;;  %v2509_v5 = vpack.c.bf16 %v369_v2, %v368_v1  ;;  %1655 = vmatprep.subr.bf16.mxu1 %v2141_v4  ;;  %v489_v6 = vld [vmem:[#allocation2 + $0x28] sm:$0xff]  ;;  %v371_v8 = vld [vmem:[#allocation2 + $0x18] sm:$0xff]  ;;  %s2144_s11 = smov 64   ;;  %vm372_vm2 = vcmask 261120   ;;  %s2145_s19 = smov 32  }
  0xcd   : > { %v2512_v9 = vpack.c.bf16 %v489_v6, %v488_v3  ;;  %1569 = vmatprep.mubr.msk.f32.mxu0 %vm2142_vm1, %v2143_v10  ;;  %v490_v11 = vld [vmem:[#allocation2 + $0x30] sm:$0xff]  ;;  %v491_v12 = vld [vmem:[#allocation2 + $0x38] sm:$0xff]  ;;  %1580 = vmatprep.mubr.msk.f32.mxu1 %vm2142_vm1, %v2143_v10  ;;  %v2519_v13 = vpack.c.bf16 %v371_v8, %v370_v7  ;;  %v1478_v14 = vld [vmem:[#allocation11] ss:$0 sm:$0xff]  ;;  %s2146_s0 = smov 96   ;;  %vm483_vm3 = vcmask 254976  }
  0xce   : > { %1651 = vmatpush3.bf16.msra.mxu0 %v2509_v5  ;;  %v2523_v15 = vpack.c.bf16 %v491_v12, %v490_v11  ;;  %453 = vrot.lane.b32.xlu0 %v1478_v14, %s2144_s11  ;;  %v1479_v16 = vld [vmem:[#allocation12] ss:$0 sm:$0xff]  ;;  %v365_v17 = vld [vmem:[#allocation4] sm:$0x3]  ;;  %v366_v18 = vld [vmem:[#allocation5] sm:$0x3] }
  0xcf   : > { %1652 = vmatprep.subr.bf16.mxu0 %v2141_v4  ;;  %1657 = vmatpush3.bf16.msra.mxu1 %v2512_v9  ;;  %v367_v27 = vld [vmem:[%s2466_s14] sm:$0x3]  ;;  %v1482_v29 = vld [vmem:[%s2476_s2 + $0x6] sm:$0x3]  ;;  %v1486_v7 = vld [vmem:[%s2466_s14 + $0x2] sm:$0x3] }
  0xd0   : > { %1658 = vmatprep.subr.bf16.mxu1 %v2141_v4  ;;  %v1490_v11 = vld [vmem:[%s2476_s2 + $0x4] sm:$0x3]  ;;  %s1299_s18 = ssub.s32 1, %s2221_s28  ;;  %s1306_s16 = sshll.u32 %s2492_s15, 4  ;;  %s2707_s16 = int_to_ptr.vmem [resolvable:$true] %s1306_s16 }
  0xd1   : > { %s2666_s6 = sshll.u32 %s1299_s18, 7  ;;  %s1271_s29 = scalar_lea.sflag [#allocation8], %s2462_s24 }
  0xd2   : > { %1654 = vmatpush3.bf16.msra.mxu0 %v2519_v13  ;;  %572 = vrot.lane.b32.xlu0 %v1479_v16, %s2144_s11  ;;  %s2147_s8 = smov [#allocation14]  }
  0xd3   : > { %1660 = vmatpush3.bf16.msra.mxu1 %v2523_v15  ;;  %1661 = vmatprep.subr.bf16.mxu0 %v2141_v4 }
  0xd4   : > { %1667 = vmatprep.subr.bf16.mxu1 %v2141_v4 }
  0xd5   : > { %1570 = vmatmul.mubr.msk.f32.vlgmr.msra.gmra.mrb[0].mxu0 %vm372_vm2, %v365_v17 }
  0xd6   : > { %1581 = vmatmul.mubr.msk.f32.vlgmr.msra.gmra.mrb[0].mxu1 %vm372_vm2, %v366_v18  ;;  %1663 = vmatpush3.bf16.msra.mxu0 %v2509_v5 }
  0xd7   : > { %1664 = vmatprep.subr.bf16.mxu0 %v2141_v4  ;;  %1669 = vmatpush3.bf16.msra.mxu1 %v2512_v9 }
  0xd8   : > { %1591 = vmatprep.mubr.msk.f32.mxu0 %vm2142_vm1, %v2143_v10  ;;  %1670 = vmatprep.subr.bf16.mxu1 %v2141_v4 }
  0xd9   : > { %1602 = vmatprep.mubr.msk.f32.mxu1 %vm2142_vm1, %v2143_v10 }
  0xda   : > { %1666 = vmatpush3.bf16.msra.mxu0 %v2519_v13 }
  0xdb   : > { %1672 = vmatpush3.bf16.msra.mxu1 %v2523_v15  ;;  %1673 = vmatprep.subr.bf16.mxu0 %v2141_v4 }
  0xdc   : > { %1679 = vmatprep.subr.bf16.mxu1 %v2141_v4 }
 0x140   : > { %v2546_v19 = vpop.permute.xlu0 %453 }
 0x144   : > { %v2548_v21 = vpop.permute.xlu0 %572 }
 0x1a8   : > { %v442_v20 = vpop.f32.mrb[0].mxu0 }
 0x1a9   : > { %v1571_v22 = vpop.f32.mrb[1].mxu0  ;;  %v561_v23 = vpop.f32.mrb[0].mxu1  ;;  %v456_v24 = vadd.f32 %v2546_v19, %v442_v20  ;;  %v446_v28 = vadd.f32 %v442_v20, %v367_v27 }
 0x1aa   : > { %v1582_v25 = vpop.f32.mrb[1].mxu1  ;;  %v575_v26 = vadd.f32 %v2548_v21, %v561_v23  ;;  %v565_v31 = vadd.f32 %v1482_v29, %v561_v23 }
 0x1ab   : > { %458 = vrot.lane.b32.xlu1 %v456_v24, %s2144_s11  ;;  %v1481_v30 = vmul.f32 -1.442695, %v446_v28 }
 0x1ac   : > { %v1484_v32 = vmul.f32 -1.442695, %v565_v31 }
 0x1ad   : > { %1809 = vpow2.f32 %v1481_v30 }
 0x1ae   : > { %1811 = vpow2.f32 %v1484_v32 }
 0x1af   : > { %577 = vrot.lane.b32.xlu1 %v575_v26, %s2144_s11 }
 0x1b7   : > { %v1810_v33 = vpop.eup %1809 }
 0x1b8   : > { %v450_v34 = vadd.f32 1.0, %v1810_v33  ;;  %v1812_v35 = vpop.eup %1811 }
 0x1b9   : > { %v569_v36 = vadd.f32 1.0, %v1812_v35 }
 0x1ba   : > { %1813 = vrcp.f32 %v450_v34 }
 0x1bb   : > { %1815 = vrcp.f32 %v569_v36 }
 0x1c4   : > { %v1814_v37 = vpop.eup %1813 }
 0x1c5   : > { %v1816_v40 = vpop.eup %1815  ;;  %v468_v50 = vsub.f32 1.0, %v1814_v37 }
 0x1c6   : > { %v587_v56 = vsub.f32 1.0, %v1816_v40 }
 0x21d   : > { %v459_v38 = vpop.permute.xlu1 %458 }
 0x21e   : > { %v461_v39 = vmul.f32 %v1814_v37, %v459_v38 }
 0x220   : > { %463 = vrot.lane.b32.xlu0 %v461_v39, %s2144_s11 }
 0x221   : > { %v578_v41 = vpop.permute.xlu1 %577 }
 0x222   : > { %v580_v42 = vmul.f32 %v1816_v40, %v578_v41 }
 0x224   : > { %582 = vrot.lane.b32.xlu1 %v580_v42, %s2144_s11 }
 0x228   : > { %474 = vrot.lane.b32.xlu1 %v365_v17, %s2145_s19 }
 0x22c   : > { %593 = vrot.lane.b32.xlu1 %v366_v18, %s2145_s19 }
 0x292   : > { %v464_v43 = vpop.permute.xlu0 %463 }
 0x293   : > { %v466_v44 = vadd.f32 %v464_v43, %v367_v27 }
 0x295   : > { %1817 = vtanh.f32 %v466_v44 }
 0x296   : > { %v583_v45 = vpop.permute.xlu1 %582 }
 0x297   : > { %v585_v46 = vadd.f32 %v1482_v29, %v583_v45 }
 0x299   : > { %1819 = vtanh.f32 %v585_v46 }
 0x29a   : > { %v475_v49 = vpop.permute.xlu1 %474 }
 0x29b   : > { %v477_v52 = vmul.f32 %v1814_v37, %v475_v49 }
 0x29e   : > { %v594_v54 = vpop.permute.xlu1 %593 }
 0x29f   : > { %v1818_v47 = vpop.eup %1817  ;;  %v596_v58 = vmul.f32 %v1816_v40, %v594_v54 }
 0x2a0   : > { %470 = vrot.lane.b32.xlu0 %v1818_v47, %s2146_s0 }
 0x2a3   : > { %v1820_v48 = vpop.eup %1819 }
 0x2a4   : > { %589 = vrot.lane.b32.xlu0 %v1820_v48, %s2146_s0 }
 0x312   : > { %v471_v51 = vpop.permute.xlu0 %470 }
 0x313   : > { %v473_v53 = vmul.f32 %v471_v51, %v468_v50 }
 0x315   : > { %v2562_v55 = vadd.f32 %v477_v52, %v473_v53 }
 0x316   : > { %v590_v57 = vpop.permute.xlu0 %589 }
 0x317   : > { %v592_v59 = vmul.f32 %v590_v57, %v587_v56  ;;  %480 = vrot.lane.b32.xlu0 %v2562_v55, %s2146_s0 }
 0x319   : > { %v2566_v60 = vadd.f32 %v596_v58, %v592_v59 }
 0x31b   : > { %599 = vrot.lane.b32.xlu1 %v2566_v60, %s2146_s0 }
 0x389   : > { %v481_v61 = vpop.permute.xlu0 %480 }
 0x38a   : > { %484 = vst.msk [vmem:[%s2490_s30] sm:$0x3] %vm483_vm3, %v481_v61  ;;  %1592 = vmatmul.mubr.msk.f32.vlgmr.msra.gmra.mrb[2].mxu0 %vm372_vm2, %v481_v61 }
 0x38b   : > { %1675 = vmatpush3.bf16.msra.mxu0 %v2509_v5  ;;  %1613 = vmatprep.mubr.msk.f32.mxu0 %vm2142_vm1, %v2143_v10 }
 0x38c   : > { %1676 = vmatprep.subr.bf16.mxu0 %v2141_v4 }
 0x38d   : > { %v600_v62 = vpop.permute.xlu1 %599 }
 0x38e   : > { %1485 = vst.msk [vmem:[%s2492_s15 + $0x6] sm:$0x3] %vm483_vm3, %v600_v62  ;;  %1603 = vmatmul.mubr.msk.f32.vlgmr.msra.gmra.mrb[2].mxu1 %vm372_vm2, %v600_v62 }
 0x38f   : > { %1678 = vmatpush3.bf16.msra.mxu0 %v2519_v13  ;;  %1681 = vmatpush3.bf16.msra.mxu1 %v2512_v9 }
 0x390   : > { %1682 = vmatprep.subr.bf16.mxu1 %v2141_v4  ;;  %1624 = vmatprep.mubr.msk.f32.mxu1 %vm2142_vm1, %v2143_v10 }
 0x391   : > { %1685 = vmatprep.subr.bf16.mxu0 %v2141_v4 }
 0x393   : > { %1684 = vmatpush3.bf16.msra.mxu1 %v2523_v15 }
 0x394   : > { %1691 = vmatprep.subr.bf16.mxu1 %v2141_v4 }
 0x45d   : > { %v678_v63 = vpop.f32.mrb[2].mxu0 }
 0x45e   : > { %v689_v0 = vadd.f32 %v678_v63, %v2546_v19  ;;  %v1593_v1 = vpop.f32.mrb[3].mxu0  ;;  %v682_v8 = vadd.f32 %v1486_v7, %v678_v63 }
 0x460   : > { %691 = vrot.lane.b32.xlu0 %v689_v0, %s2144_s11  ;;  %v1488_v12 = vmul.f32 -1.442695, %v682_v8 }
 0x461   : > { %v789_v2 = vpop.f32.mrb[2].mxu1 }
 0x462   : > { %v800_v3 = vadd.f32 %v789_v2, %v2548_v21  ;;  %v1604_v6 = vpop.f32.mrb[3].mxu1  ;;  %v793_v14 = vadd.f32 %v1490_v11, %v789_v2  ;;  %1821 = vpow2.f32 %v1488_v12 }
 0x464   : > { %802 = vrot.lane.b32.xlu1 %v800_v3, %s2144_s11  ;;  %v1492_v16 = vmul.f32 -1.442695, %v793_v14 }
 0x466   : > { %1823 = vpow2.f32 %v1492_v16 }
 0x46c   : > { %v1822_v17 = vpop.eup %1821 }
 0x46d   : > { %v686_v18 = vadd.f32 1.0, %v1822_v17 }
 0x46f   : > { %1825 = vrcp.f32 %v686_v18 }
 0x470   : > { %v1824_v20 = vpop.eup %1823 }
 0x471   : > { %v797_v22 = vadd.f32 1.0, %v1824_v20 }
 0x473   : > { %1827 = vrcp.f32 %v797_v22 }
 0x479   : > { %v1826_v23 = vpop.eup %1825 }
 0x47a   : > { %v701_v35 = vsub.f32 1.0, %v1826_v23  ;;  %v707_v37 = vmul.f32 %v1826_v23, %v2562_v55 }
 0x47d   : > { %v1828_v26 = vpop.eup %1827 }
 0x47e   : > { %v812_v40 = vsub.f32 1.0, %v1828_v26  ;;  %v818_v42 = vmul.f32 %v1828_v26, %v2566_v60 }
 0x4d2   : > { %v692_v24 = vpop.permute.xlu0 %691 }
 0x4d3   : > { %v694_v25 = vmul.f32 %v1826_v23, %v692_v24 }
 0x4d5   : > { %696 = vrot.lane.b32.xlu0 %v694_v25, %s2144_s11 }
 0x4d6   : > { %v803_v27 = vpop.permute.xlu1 %802 }
 0x4d7   : > { %v805_v28 = vmul.f32 %v1828_v26, %v803_v27 }
 0x4d9   : > { %807 = vrot.lane.b32.xlu1 %v805_v28, %s2144_s11 }
 0x547   : > { %v697_v29 = vpop.permute.xlu0 %696 }
 0x548   : > { %v699_v30 = vadd.f32 %v1486_v7, %v697_v29 }
 0x54a   : > { %1829 = vtanh.f32 %v699_v30 }
 0x54b   : > { %v808_v31 = vpop.permute.xlu1 %807 }
 0x54c   : > { %v810_v32 = vadd.f32 %v1490_v11, %v808_v31  ;;  %v1502_v31 = vld [vmem:[%s2466_s14 + $0x6] sm:$0x3] }
 0x54e   : > { %1831 = vtanh.f32 %v810_v32 }
 0x554   : > { %v1830_v33 = vpop.eup %1829 }
 0x555   : > { %703 = vrot.lane.b32.xlu0 %v1830_v33, %s2146_s0  ;;  %v1159_v33 = vld [vmem:[%s2476_s2] sm:$0x3] }
 0x558   : > { %v1832_v34 = vpop.eup %1831 }
 0x559   : > { %814 = vrot.lane.b32.xlu1 %v1832_v34, %s2146_s0 }
 0x5c7   : > { %v704_v36 = vpop.permute.xlu0 %703 }
 0x5c8   : > { %v706_v38 = vmul.f32 %v704_v36, %v701_v35 }
 0x5ca   : > { %v2599_v39 = vadd.f32 %v707_v37, %v706_v38 }
 0x5cb   : > { %v815_v41 = vpop.permute.xlu1 %814 }
 0x5cc   : > { %v817_v43 = vmul.f32 %v815_v41, %v812_v40  ;;  %710 = vrot.lane.b32.xlu0 %v2599_v39, %s2146_s0 }
 0x5ce   : > { %v2604_v44 = vadd.f32 %v818_v42, %v817_v43 }
 0x5d0   : > { %821 = vrot.lane.b32.xlu1 %v2604_v44, %s2146_s0 }
 0x63e   : > { %v711_v45 = vpop.permute.xlu0 %710 }
 0x63f   : > { %1489 = vst.msk [vmem:[%s2490_s30 + $0x2] sm:$0x3] %vm483_vm3, %v711_v45  ;;  %1614 = vmatmul.mubr.msk.f32.vlgmr.msra.gmra.mrb[4].mxu0 %vm372_vm2, %v711_v45 }
 0x640   : > { %1687 = vmatpush3.bf16.msra.mxu0 %v2509_v5  ;;  %1635 = vmatprep.mubr.msk.f32.mxu0 %vm2142_vm1, %v2143_v10 }
 0x641   : > { %1688 = vmatprep.subr.bf16.mxu0 %v2141_v4 }
 0x642   : > { %v822_v46 = vpop.permute.xlu1 %821 }
 0x643   : > { %1493 = vst.msk [vmem:[%s2492_s15 + $0x4] sm:$0x3] %vm483_vm3, %v822_v46  ;;  %1625 = vmatmul.mubr.msk.f32.vlgmr.msra.gmra.mrb[4].mxu1 %vm372_vm2, %v822_v46 }
 0x644   : > { %1690 = vmatpush3.bf16.msra.mxu0 %v2519_v13  ;;  %1693 = vmatpush3.bf16.msra.mxu1 %v2512_v9  ;;  %v1494_v9 = vld [vmem:[%s2466_s14 + $0x4] sm:$0x3]  ;;  %s1519_s14 = sshll.u32 %s2221_s28, 7 }
 0x645   : > { %1694 = vmatprep.subr.bf16.mxu1 %v2141_v4  ;;  %1646 = vmatprep.mubr.msk.f32.mxu1 %vm2142_vm1, %v2143_v10  ;;  %v1498_v4 = vld [vmem:[%s2476_s2 + $0x2] sm:$0x3]  ;;  %s1289_s2 = sshll.u32 %s2490_s30, 4  ;;  %s2662_s13 = scalar_lea.hbm %s2778_s5, %s1519_s14  ;;  %s2664_s2 = int_to_ptr.vmem [resolvable:$true] %s1289_s2 }
 0x646   : > { %s1995_s28 = scalar_lea.vmem %s2664_s2, 128 }
 0x647   : > { %p1996_p2 = scmp.ne.s32.totalorder %s2664_s2, %s1995_s28 }
 0x648   : > { %1696 = vmatpush3.bf16.msra.mxu1 %v2523_v15 }
 0x649   : > { %p1997_p3 = pnand %p1996_p2, %p2345_p10 }
 0x64b   : > { %p1998_p11 = pneg %p1997_p3 }
 0x712   : > { %v900_v5 = vpop.f32.mrb[4].mxu0 }
 0x713   : > { %v911_v47 = vadd.f32 %v900_v5, %v2546_v19  ;;  %v1615_v48 = vpop.f32.mrb[5].mxu0  ;;  %v904_v13 = vadd.f32 %v1494_v9, %v900_v5 }
 0x715   : > { %913 = vrot.lane.b32.xlu0 %v911_v47, %s2144_s11  ;;  %v1496_v52 = vmul.f32 -1.442695, %v904_v13 }
 0x716   : > { %v1011_v49 = vpop.f32.mrb[4].mxu1 }
 0x717   : > { %v1022_v50 = vadd.f32 %v1011_v49, %v2548_v21  ;;  %v1626_v51 = vpop.f32.mrb[5].mxu1  ;;  %v1015_v53 = vadd.f32 %v1498_v4, %v1011_v49  ;;  %1833 = vpow2.f32 %v1496_v52 }
 0x719   : > { %1024 = vrot.lane.b32.xlu1 %v1022_v50, %s2144_s11  ;;  %v1500_v10 = vmul.f32 -1.442695, %v1015_v53 }
 0x71b   : > { %1835 = vpow2.f32 %v1500_v10 }
 0x721   : > { %v1834_v15 = vpop.eup %1833 }
 0x722   : > { %v908_v54 = vadd.f32 1.0, %v1834_v15 }
 0x724   : > { %1837 = vrcp.f32 %v908_v54 }
 0x725   : > { %v1836_v55 = vpop.eup %1835 }
 0x726   : > { %v1019_v56 = vadd.f32 1.0, %v1836_v55 }
 0x728   : > { %1839 = vrcp.f32 %v1019_v56 }
 0x72e   : > { %v1838_v57 = vpop.eup %1837 }
 0x72f   : > { %v923_v7 = vsub.f32 1.0, %v1838_v57  ;;  %v929_v11 = vmul.f32 %v1838_v57, %v2599_v39 }
 0x732   : > { %v1840_v60 = vpop.eup %1839 }
 0x733   : > { %v1034_v16 = vsub.f32 1.0, %v1840_v60  ;;  %v1040_v18 = vmul.f32 %v1840_v60, %v2604_v44 }
 0x787   : > { %v914_v58 = vpop.permute.xlu0 %913 }
 0x788   : > { %v916_v59 = vmul.f32 %v1838_v57, %v914_v58 }
 0x78a   : > { %918 = vrot.lane.b32.xlu0 %v916_v59, %s2144_s11 }
 0x78b   : > { %v1025_v61 = vpop.permute.xlu1 %1024 }
 0x78c   : > { %v1027_v62 = vmul.f32 %v1840_v60, %v1025_v61 }
 0x78e   : > { %1029 = vrot.lane.b32.xlu1 %v1027_v62, %s2144_s11 }
 0x7fc   : > { %v919_v63 = vpop.permute.xlu0 %918 }
 0x7fd   : > { %v921_v0 = vadd.f32 %v1494_v9, %v919_v63 }
 0x7ff   : > { %1841 = vtanh.f32 %v921_v0 }
 0x800   : > { %v1030_v1 = vpop.permute.xlu1 %1029 }
 0x801   : > { %v1032_v2 = vadd.f32 %v1498_v4, %v1030_v1 }
 0x803   : > { %1843 = vtanh.f32 %v1032_v2 }
 0x809   : > { %v1842_v3 = vpop.eup %1841 }
 0x80a   : > { %925 = vrot.lane.b32.xlu0 %v1842_v3, %s2146_s0 }
 0x80d   : > { %v1844_v6 = vpop.eup %1843 }
 0x80e   : > { %1036 = vrot.lane.b32.xlu1 %v1844_v6, %s2146_s0 }
 0x87c   : > { %v926_v8 = vpop.permute.xlu0 %925 }
 0x87d   : > { %v928_v12 = vmul.f32 %v926_v8, %v923_v7 }
 0x87f   : > { %v930_v14 = vadd.f32 %v929_v11, %v928_v12 }
 0x880   : > { %v1037_v17 = vpop.permute.xlu1 %1036 }
 0x881   : > { %v1039_v20 = vmul.f32 %v1037_v17, %v1034_v16  ;;  %932 = vrot.lane.b32.xlu0 %v930_v14, %s2146_s0 }
 0x883   : > { %v1041_v22 = vadd.f32 %v1040_v18, %v1039_v20 }
 0x885   : > { %1043 = vrot.lane.b32.xlu1 %v1041_v22, %s2146_s0 }
 0x8f3   : > { %v933_v23 = vpop.permute.xlu0 %932 }
 0x8f4   : > { %1497 = vst.msk [vmem:[%s2490_s30 + $0x4] sm:$0x3] %vm483_vm3, %v933_v23  ;;  %1636 = vmatmul.mubr.msk.f32.vlgmr.msra.gmra.mrb[6].mxu0 %vm372_vm2, %v933_v23 }
 0x8f7   : > { %v1044_v24 = vpop.permute.xlu1 %1043 }
 0x8f8   : > { %1501 = vst.msk [vmem:[%s2492_s15 + $0x2] sm:$0x3] %vm483_vm3, %v1044_v24  ;;  %1647 = vmatmul.mubr.msk.f32.vlgmr.msra.gmra.mrb[6].mxu1 %vm372_vm2, %v1044_v24 }
 0x9c7   : > { %v1122_v25 = vpop.f32.mrb[6].mxu0 }
 0x9c8   : > { %v1133_v26 = vadd.f32 %v1122_v25, %v2546_v19  ;;  %v1637_v27 = vpop.f32.mrb[7].mxu0  ;;  %v1126_v32 = vadd.f32 %v1502_v31, %v1122_v25 }
 0x9ca   : > { %1135 = vrot.lane.b32.xlu0 %v1133_v26, %s2144_s11  ;;  %v1504_v34 = vmul.f32 -1.442695, %v1126_v32 }
 0x9cb   : > { %v1232_v28 = vpop.f32.mrb[6].mxu1 }
 0x9cc   : > { %v1243_v29 = vadd.f32 %v1232_v28, %v2548_v21  ;;  %v1648_v30 = vpop.f32.mrb[7].mxu1  ;;  %v1236_v35 = vadd.f32 %v1232_v28, %v1159_v33  ;;  %1845 = vpow2.f32 %v1504_v34 }
 0x9ce   : > { %1245 = vrot.lane.b32.xlu1 %v1243_v29, %s2144_s11  ;;  %v1507_v36 = vmul.f32 -1.442695, %v1236_v35 }
 0x9d0   : > { %1847 = vpow2.f32 %v1507_v36 }
 0x9d6   : > { %v1846_v37 = vpop.eup %1845 }
 0x9d7   : > { %v1130_v38 = vadd.f32 1.0, %v1846_v37 }
 0x9d9   : > { %1849 = vrcp.f32 %v1130_v38 }
 0x9da   : > { %v1848_v19 = vpop.eup %1847 }
 0x9db   : > { %v1240_v39 = vadd.f32 1.0, %v1848_v19 }
 0x9dd   : > { %1851 = vrcp.f32 %v1240_v39 }
 0x9e3   : > { %v1850_v40 = vpop.eup %1849 }
 0x9e4   : > { %v1145_v50 = vsub.f32 1.0, %v1850_v40  ;;  %v1151_v9 = vmul.f32 %v1850_v40, %v930_v14 }
 0x9e7   : > { %v1852_v42 = vpop.eup %1851 }
 0x9e8   : > { %v1255_v52 = vsub.f32 1.0, %v1852_v42  ;;  %v1261_v10 = vmul.f32 %v1852_v42, %v1041_v22 }
 0xa3c   : > { %v1136_v41 = vpop.permute.xlu0 %1135 }
 0xa3d   : > { %v1138_v21 = vmul.f32 %v1850_v40, %v1136_v41 }
 0xa3f   : > { %1140 = vrot.lane.b32.xlu0 %v1138_v21, %s2144_s11 }
 0xa40   : > { %v1246_v43 = vpop.permute.xlu1 %1245 }
 0xa41   : > { %v1248_v44 = vmul.f32 %v1852_v42, %v1246_v43 }
 0xa43   : > { %1250 = vrot.lane.b32.xlu1 %v1248_v44, %s2144_s11  ;;  %s1999_s11 = sshll.u32 %s2147_s8, 4  ;;  %s2000_s11 = int_to_ptr.vmem [resolvable:$false] %s1999_s11 }
 0xa44   : > { %p2002_p6 = scmp.lt.s32.totalorder %s2664_s2, %s2000_s11 }
 0xab1   : > { %v1141_v45 = vpop.permute.xlu0 %1140 }
 0xab2   : > { %v1143_v46 = vadd.f32 %v1502_v31, %v1141_v45 }
 0xab4   : > { %1853 = vtanh.f32 %v1143_v46 }
 0xab5   : > { %v1251_v5 = vpop.permute.xlu1 %1250 }
 0xab6   : > { %v1253_v47 = vadd.f32 %v1251_v5, %v1159_v33 }
 0xab8   : > { %1855 = vtanh.f32 %v1253_v47 }
 0xabe   : > { %v1854_v48 = vpop.eup %1853 }
 0xabf   : > { %1147 = vrot.lane.b32.xlu0 %v1854_v48, %s2146_s0 }
 0xac2   : > { %v1856_v49 = vpop.eup %1855 }
 0xac3   : > { %1257 = vrot.lane.b32.xlu1 %v1856_v49, %s2146_s0 }
 0xb31   : > { %v1148_v51 = vpop.permute.xlu0 %1147 }
 0xb32   : > { %v1150_v13 = vmul.f32 %v1148_v51, %v1145_v50 }
 0xb34   : > { %v1152_v4 = vadd.f32 %v1151_v9, %v1150_v13 }
 0xb35   : > { %v1258_v53 = vpop.permute.xlu1 %1257 }
 0xb36   : > { %v1260_v15 = vmul.f32 %v1258_v53, %v1255_v52  ;;  %1154 = vrot.lane.b32.xlu0 %v1152_v4, %s2146_s0 }
 0xb38   : > { %v1262_v54 = vadd.f32 %v1261_v10, %v1260_v15 }
 0xb3a   : > { %1264 = vrot.lane.b32.xlu1 %v1262_v54, %s2146_s0  ;;  %s2001_s0 = scalar_lea.vmem %s2000_s11, 256 }
 0xb3b   : > { %p2003_p12 = scmp.lt.s32.totalorder %s2001_s0, %s1995_s28 }
 0xb3d   : > { %p2004_p8 = por %p2003_p12, %p2002_p6 }
 0xb3f   : > { %p2005_p9 = pnand %p2004_p8, %p1998_p11 }
 0xba8   : > { %v1155_v55 = vpop.permute.xlu0 %1154 }
 0xba9   : > { %1505 = vst.msk [vmem:[%s2490_s30 + $0x6] sm:$0x3] %vm483_vm3, %v1155_v55  ;;  %1268 = vst.msk [vmem:[#allocation4] sm:$0x3] %vm483_vm3, %v1155_v55 }
 0xbaa   : > { %2008 = shalt.err (!%p2005_p9)
}
 0xbab   : > { %s2009_s30 = scalar_lea.hbm %s2662_s13, 128  ;;  %s2013_s3 = scalar_lea.hbm %s2778_s5, 256 }
 0xbac   : > { %p2010_p0 = scmp.ne.s32.totalorder %s2662_s13, %s2009_s30  ;;  %p2014_p7 = scmp.lt.u32.totalorder %s2662_s13, %s2778_s5 }
 0xbad   : > { %p2015_p13 = scmp.lt.u32.totalorder %s2013_s3, %s2009_s30  ;;  %p2017_p2 = scmp.lt.u32.totalorder %s2009_s30, %s2662_s13 }
 0xbae   : > { %p2011_p1 = pnand %p2010_p0, %p2345_p10 }
 0xbaf   : > { %p2016_p5 = por %p2015_p13, %p2014_p7 }
 0xbb0   : > { %p2012_p4 = pneg %p2011_p1 }
 0xbb1   : > { %p2018_p3 = por %p2017_p2, %p2016_p5 }
 0xbb3   : > { %p2019_p11 = pnand %p2018_p3, %p2012_p4 }
 0xbb5   : > { %2022 = shalt.err (!%p2019_p11)
}
 0xbb6   : > { %s2148_s28 = smov 2   ;;  %s2835_s30 = sld [smem:[#allocation35_spill]]  ;;  %v1265_v56 = vpop.permute.xlu1 %1264 }
 0xbb7   : > { %1709 = dma.vmem_to_hbm [thread:$0]  (%p2345_p10), %s2664_s2, 128, %s2662_s13, %s1271_s29, %s2145_s19, %s2145_s19, %s2148_s28   ;;  %1269 = vst.msk [vmem:[#allocation5] sm:$0x3] %vm483_vm3, %v1265_v56 }
 0xbb8   : > { %1267 = vst.msk [vmem:[%s2492_s15] sm:$0x3] %vm483_vm3, %v1265_v56  ;;  %s2714_s17 = scalar_lea.sflag [#allocation16], %s278_s12  ;;  %s2023_s24 = scalar_lea.vmem %s2707_s16, 128 }
 0xbb9   : > { %p2024_p10 = scmp.ne.s32.totalorder %s2707_s16, %s2023_s24  ;;  %p2836_p6 = scmp.ne.s32.totalorder %s2803_s9, 0 }
 0xbba   : > { %s2149_s2 = smov [#allocation15]  }
 0xbbb   : > { %p2025_p12 = pnand %p2024_p10, %p2836_p6  ;;  %s2027_s13 = sshll.u32 %s2149_s2, 4  ;;  %s2028_s13 = int_to_ptr.vmem [resolvable:$false] %s2027_s13 }
 0xbbc   : > { %s2703_s14 = scalar_lea.hbm %s2835_s30, %s2666_s6  ;;  %s2029_s6 = scalar_lea.vmem %s2028_s13, 256 }
 0xbbd   : > { %p2026_p8 = pneg %p2025_p12  ;;  %p2030_p9 = scmp.lt.s32.totalorder %s2707_s16, %s2028_s13 }
 0xbbe   : > { %p2031_p0 = scmp.lt.s32.totalorder %s2029_s6, %s2023_s24 }
 0xbc0   : > { %p2032_p1 = por %p2031_p0, %p2030_p9 }
 0xbc2   : > { %p2033_p4 = pnand %p2032_p1, %p2026_p8 }
 0xbc4   : > { %2036 = shalt.err (!%p2033_p4)
}
 0xbc5   : > { %s2037_s12 = scalar_lea.hbm %s2703_s14, 128  ;;  %s2041_s18 = scalar_lea.hbm %s2835_s30, 256 }
 0xbc6   : > { %p2038_p7 = scmp.ne.s32.totalorder %s2703_s14, %s2037_s12  ;;  %p2042_p2 = scmp.lt.u32.totalorder %s2703_s14, %s2835_s30 }
 0xbc7   : > { %p2043_p3 = scmp.lt.u32.totalorder %s2041_s18, %s2037_s12  ;;  %p2045_p10 = scmp.lt.u32.totalorder %s2037_s12, %s2703_s14 }
 0xbc8   : > { %p2039_p13 = pnand %p2038_p7, %p2836_p6 }
 0xbc9   : > { %p2044_p11 = por %p2043_p3, %p2042_p2 }
 0xbca   : > { %p2040_p5 = pneg %p2039_p13 }
 0xbcb   : > { %p2046_p12 = por %p2045_p10, %p2044_p11 }
 0xbcd   : > { %p2047_p8 = pnand %p2046_p12, %p2040_p5 }
 0xbcf   : > { %2050 = shalt.err (!%p2047_p8)
}
 0xbd0   : > { %1710 = dma.vmem_to_hbm [thread:$0]  (%p2836_p6), %s2707_s16, 128, %s2703_s14, %s2714_s17, %s2145_s19, %s2145_s19, %s2148_s28  }
 0xbd1 PF: > { %s2837_s8 = sld [smem:[#allocation29_spill]]  ;;  %s2838_s11 = sld [smem:[#allocation30_spill]] }
 0xbd2   : > { %p2840_p0 = scmp.ge.s32.totalorder %s2131_s27, 2 }
 0xbd7   : > { %s1321_s0 = sand.u32 1, %s2837_s8   ;;  %p2839_p9 = scmp.ne.s32.totalorder %s2838_s11, 0 }
 0xbd8   : > { %s1322_s24 = scalar_lea.sflag [#allocation8], %s1321_s0 }
 0xbd9   : > { %p1728_p1 = pnand %p2840_p0, %p2839_p9 }
 0xbdb   : > { %2098 = dma.done.wait (!%p1728_p1), %s1322_s24, 128  }
 0xbdc   : > { %2100 = vsyncadd (!%p1728_p1), %s1322_s24, 4294967168  ;;  %s2841_s2 = sld [smem:[#allocation28_spill]]  ;;  %s2842_s9 = sld [smem:[#allocation31_spill]] }
 0xbdd   : > { %p2844_p7 = pmov %p2840_p0 }
 0xbe2   : > { %s1330_s13 = sand.u32 1, %s2841_s2   ;;  %p2843_p4 = scmp.ne.s32.totalorder %s2842_s9, 0 }
 0xbe3   : > { %s1331_s6 = scalar_lea.sflag [#allocation16], %s1330_s13 }
 0xbe4   : > { %p1731_p13 = pnand %p2844_p7, %p2843_p4 }
 0xbe6   : > { %2102 = dma.done.wait (!%p1731_p13), %s1331_s6, 128  }
 0xbe7   : > { %2104 = vsyncadd (!%p1731_p13), %s1331_s6, 4294967168  ;;  %s2845_s19 = smov %s2419_s21  ;;  %p27_p6 = scmp.ge.s32.totalorder %s2404_s20, 4  }
 0xbe8   : > { %s2846_s21 = smov %s2111_s22  ;;  %s2847_s22 = smov %s2115_s23 }
 0xbe9   : > { %s2848_s23 = smov %s2845_s19  ;;  %s2849_s24 = smov %s2123_s25 }
 0xbea   : > { %s2850_s25 = smov %s2127_s26  ;;  %s2851_s26 = smov %s2413_s10 }
 0xbeb   : > { %s2852_s27 = smov %s2404_s20  ;;  %29 = sbr.rel (!%p27_p6) target bundleno = 17 (0x11), region = 140 }
 0xbf2   :  { %1336 = vsyncpa [#allocation7], 1 }
 0xbf3   :  { %1338 = vsyncpa [#allocation7 + $0x1], 1 }
 0xbf4   :  { %1339 = vsyncpa [#allocation10], 1 }
 0xbf5   :  { %1341 = vsyncpa [#allocation10 + $0x1], 1 }
 0xbf6   :  { %1342 = vsyncpa [#allocation13], 1 }
 0xbf7   :  { %1343 = vsyncpa [#allocation8], 1 }
 0xbf8   :  { %1345 = vsyncpa [#allocation8 + $0x1], 1 }
 0xbf9   :  { %1346 = vsyncpa [#allocation16], 1 }
 0xbfa   :  { %1348 = vsyncpa [#allocation16 + $0x1], 1 }
 0xbfb   :  { %1349 = vsyncmov [#allocation3] }
 0xbfe   :  { %s1350_s27 = vpop.sfrf %1349 }
 0xbff   :  { %p1516_p5 = scmp.ne.s32.totalorder %s1350_s27, 0 }
 0xc01   :  { %1354 = shalt.err (%p1516_p5)  }

</bundles_post_ra>
